<compile_context>
chip_gen: v5e
topology: v5e:2x2
jax: 0.10.0
libtpu: 0.0.40
codegen_flags: <defaults>
</compile_context>

<pallas_src>
import math

import jax
import jax.numpy as jnp
from jax.experimental import pallas as pl
from jax.experimental.pallas import tpu as pltpu

K = 4                          # number of neighbor volumes (module's k)
LOG_TEMP_BIAS = math.log(1.0)  # temp_opt['temp_bias'] = 1
EXPM1_GUARD = 1e-7             # guard used by N3Net's log1mexp
_PAD_DSQ = 1e30                # d_sq for padded columns -> logit -> -inf -> weight 0


def _round_up(v, m):
    return ((v + m - 1) // m) * m


def _n3_agg_kernel(ye_ref, xet_ref, x_ref, dsq_ref, lt_ref, out_ref):
    # Leading batch dim is squeezed away by the BlockSpecs (None block dim).
    ye = ye_ref[...]       # [TM, E]  query embedding tile
    xet = xet_ref[...]     # [E, N]   database embeddings, pre-transposed
    xdb = x_ref[...]       # [N, F]   database items
    d_sq = dsq_ref[...]    # [1, N]   ||xe||^2 (precomputed in the wrapper)
    lt = lt_ref[...]       # [TM, 1]  per-query log temperature

    # Per-row inverse temperature: TM exps, then folded (with the 2x) into the
    # small [TM,E] operand so the [TM,N] tile only sees one mul + one sub.
    inv_temp = jnp.exp(-(lt + LOG_TEMP_BIAS))                           # [TM, 1]
    ye_s = ye * (2.0 * inv_temp)                                        # [TM, E]

    # ---- "search": exhaustive negated, temperature-scaled squared-L2.
    # ||ye||^2 is dropped (per-row constant, shift-invariant under softmax and
    # 1-softmax; valid because distance_bn is off).
    cross = jnp.dot(ye_s, xet, preferred_element_type=jnp.float32)      # [TM, N] (MXU)
    logits = cross - inv_temp * d_sq                                    # [TM, N]

    # ---- NeuralNearestNeighbors: the ONLY full-tile transcendental pass.
    row_max = jnp.max(logits, axis=-1, keepdims=True)                   # [TM, 1]
    e = jnp.exp(logits - row_max)                                       # [TM, N]

    # K continuous-kNN weight volumes; suppression is multiplicative on e:
    #   e *= max(1 - w, eps)   ==   exp(logits + log(max(1 - softmax, eps)))
    # (same 1e-7 guard as N3Net's log1mexp), so no re-exponentiation / logs.
    zs = []
    for i in range(K):
        s = jnp.sum(e, axis=-1, keepdims=True)                          # [TM, 1]
        w = e * pl.reciprocal(s, approx=True)                           # softmax weights
        # wpsum: per-volume aggregation matmul; only [TM, F] stays live.
        zs.append(jnp.dot(w, xdb, preferred_element_type=jnp.float32))  # [TM, F]
        if i + 1 < K:
            e = e * jnp.maximum(1.0 - w, EXPM1_GUARD)

    # 'b q (k c)' layout assembled in-register; single full-width (K*F-lane)
    # store into the output tile.
    out_ref[...] = jnp.concatenate(zs, axis=-1).astype(out_ref.dtype)   # [TM, K*F]


def n3_aggregation(x, xe, ye, log_temp, *, tm=128):
    """N3AggregationBase.forward with dense search (O == N) and ps == 1.

    x: [B, N, F], xe: [B, N, E], ye: [B, M, E], log_temp: [B, M, 1]
    returns z: [B, M, K*F]   (module's 'b q (k c)' channel layout).
    """
    B, N, f_dim = x.shape
    _, M, E = ye.shape

    # Query tile (multiple of 8 sublanes); v6e can profitably use tm=256.
    tm = _round_up(min(tm, _round_up(M, 8)), 8)
    m_pad = _round_up(M, tm)
    n_pad = _round_up(N, 128)

    # Pre-transpose database embeddings so the distance matmul is [TM,E]@[E,N]
    # with N on the lane axis, and precompute ||xe||^2 once (m-invariant).
    xe_t = jnp.swapaxes(xe, 1, 2)                                       # [B, E, N]
    d_sq = jnp.sum(xe * xe, axis=-1)[:, None, :]                        # [B, 1, N]

    # Masking path for ragged N: padded columns get zero embeddings/items and
    # a huge d_sq, so their logits are -inf and they receive zero weight.
    if n_pad != N:
        xe_t = jnp.pad(xe_t, ((0, 0), (0, 0), (0, n_pad - N)))
        x = jnp.pad(x, ((0, 0), (0, n_pad - N), (0, 0)))
        d_sq = jnp.pad(d_sq, ((0, 0), (0, 0), (0, n_pad - N)),
                       constant_values=_PAD_DSQ)
    if m_pad != M:
        ye = jnp.pad(ye, ((0, 0), (0, m_pad - M), (0, 0)))
        log_temp = jnp.pad(log_temp, ((0, 0), (0, m_pad - M), (0, 0)))

    kf = K * f_dim
    cost = pl.CostEstimate(
        flops=2 * B * m_pad * n_pad * (E + kf),
        transcendentals=B * m_pad * (n_pad + 1),
        bytes_accessed=4 * B * (n_pad * f_dim + E * n_pad + m_pad * E
                                + m_pad + n_pad + m_pad * kf),
    )

    out = pl.pallas_call(
        _n3_agg_kernel,
        out_shape=jax.ShapeDtypeStruct((B, m_pad, kf), jnp.float32),
        grid_spec=pltpu.PrefetchScalarGridSpec(
            num_scalar_prefetch=0,
            grid=(B, m_pad // tm),                                      # m innermost
            in_specs=[
                pl.BlockSpec((None, tm, E), lambda b, m: (b, m, 0)),        # ye tile
                pl.BlockSpec((None, E, n_pad), lambda b, m: (b, 0, 0)),     # xe^T (resident over m)
                pl.BlockSpec((None, n_pad, f_dim), lambda b, m: (b, 0, 0)), # x    (resident over m)
                pl.BlockSpec((None, 1, n_pad), lambda b, m: (b, 0, 0)),     # ||xe||^2 (resident over m)
                pl.BlockSpec((None, tm, 1), lambda b, m: (b, m, 0)),        # log_temp tile
            ],
            out_specs=pl.BlockSpec((None, tm, kf), lambda b, m: (b, m, 0)),
        ),
        compiler_params=pltpu.CompilerParams(
            dimension_semantics=("parallel", "parallel"),
            vmem_limit_bytes=32 * 1024 * 1024,   # v5e scoped default is 16 MiB
        ),
        cost_estimate=cost,
    )(ye, xe_t, x, d_sq, log_temp)

    return out[:, :M, :]


def n3_aggregation_ref(x, xe, ye, log_temp):
    """Pure-JAX reference of the same semantics (for validation)."""
    cross = jnp.einsum('bme,bne->bmn', ye, xe)
    d = (jnp.sum(ye * ye, -1)[..., None]
         + jnp.sum(xe * xe, -1)[:, None, :] - 2.0 * cross)
    logits = (-d) / jnp.exp(log_temp + LOG_TEMP_BIAS)
    outs = []
    for i in range(K):
        w = jax.nn.softmax(logits, axis=-1)
        outs.append(jnp.einsum('bmn,bnf->bmf', w, x))
        if i + 1 < K:
            # log1mexp(log_softmax) with the same guard, computed from w.
            logits = logits + jnp.log(jnp.maximum(1.0 - w, EXPM1_GUARD))
    return jnp.concatenate(outs, axis=-1)


if __name__ == "__main__":
    key = jax.random.PRNGKey(0)
    B, N, M, E, F_DIM = 2, 128, 128, 32, 32
    k1, k2, k3, k4 = jax.random.split(key, 4)
    x = jax.random.normal(k1, (B, N, F_DIM), jnp.float32)        # database items
    xe = jax.random.normal(k2, (B, N, E), jnp.float32)           # database embeds
    ye = jax.random.normal(k3, (B, M, E), jnp.float32)           # query embeds
    # external per-query log-temperature (~log 8): keeps the iterative softmax
    # suppression away from its ill-conditioned w -> 1 regime so the kernel /
    # reference comparison is numerically meaningful.
    log_temp = math.log(8.0) + 0.1 * jax.random.normal(k4, (B, M, 1), jnp.float32)

    z = n3_aggregation(x, xe, ye, log_temp)
    jax.block_until_ready(z)

    z_ref = n3_aggregation_ref(x, xe, ye, log_temp)
    assert z.shape == (B, M, K * F_DIM)
    # Tolerance covers XLA's default (bf16-pass) f32 matmul precision in the
    # pure-JAX reference on real TPUs vs the kernel's full-f32 MXU matmuls and
    # the approx reciprocal; in interpret mode / CPU the two agree to ~1e-4.
    assert jnp.allclose(z, z_ref, atol=2e-2, rtol=2e-2), "mismatch vs JAX reference"
    print("KERNEL_OK")
</pallas_src>

<mosaic_0001>
module attributes {stable_mosaic.version = 11 : i64} {
  func.func @_n3_agg_kernel(%arg0: i32, %arg1: i32, %arg2: memref<1x128x32xf32, #tpu.memory_space<vmem>>, %arg3: memref<1x32x128xf32, #tpu.memory_space<vmem>>, %arg4: memref<1x128x32xf32, #tpu.memory_space<vmem>>, %arg5: memref<1x1x128xf32, #tpu.memory_space<vmem>>, %arg6: memref<1x128x1xf32, #tpu.memory_space<vmem>>, %arg7: memref<1x128x128xf32, #tpu.memory_space<vmem>>) attributes {dimension_semantics = [#tpu.dimension_semantics<parallel>, #tpu.dimension_semantics<parallel>], iteration_bounds = array<i64: 2, 1>, scalar_prefetch = 0 : i64, scratch_operands = 0 : i64, tpu.core_type = #tpu.core_type<tc>, window_params = [{transform_indices = @transform_0, window_bounds = array<i64: 1, 128, 32>}, {transform_indices = @transform_1, window_bounds = array<i64: 1, 32, 128>}, {transform_indices = @transform_2, window_bounds = array<i64: 1, 128, 32>}, {transform_indices = @transform_3, window_bounds = array<i64: 1, 1, 128>}, {transform_indices = @transform_4, window_bounds = array<i64: 1, 128, 1>}, {transform_indices = @transform_5, window_bounds = array<i64: 1, 128, 128>}]} {
    %c0 = arith.constant 0 : index
    %c0_0 = arith.constant 0 : index
    %c0_1 = arith.constant 0 : index
    %0 = vector.load %arg2[%c0, %c0_0, %c0_1] : memref<1x128x32xf32, #tpu.memory_space<vmem>>, vector<1x128x32xf32>
    %1 = vector.shape_cast %0 : vector<1x128x32xf32> to vector<128x32xf32>
    %c0_2 = arith.constant 0 : index
    %c0_3 = arith.constant 0 : index
    %c0_4 = arith.constant 0 : index
    %2 = vector.load %arg3[%c0_2, %c0_3, %c0_4] : memref<1x32x128xf32, #tpu.memory_space<vmem>>, vector<1x32x128xf32>
    %3 = vector.shape_cast %2 : vector<1x32x128xf32> to vector<32x128xf32>
    %c0_5 = arith.constant 0 : index
    %c0_6 = arith.constant 0 : index
    %c0_7 = arith.constant 0 : index
    %4 = vector.load %arg4[%c0_5, %c0_6, %c0_7] : memref<1x128x32xf32, #tpu.memory_space<vmem>>, vector<1x128x32xf32>
    %5 = vector.shape_cast %4 : vector<1x128x32xf32> to vector<128x32xf32>
    %c0_8 = arith.constant 0 : index
    %c0_9 = arith.constant 0 : index
    %c0_10 = arith.constant 0 : index
    %6 = vector.load %arg5[%c0_8, %c0_9, %c0_10] : memref<1x1x128xf32, #tpu.memory_space<vmem>>, vector<1x1x128xf32>
    %7 = vector.shape_cast %6 : vector<1x1x128xf32> to vector<1x128xf32>
    %c0_11 = arith.constant 0 : index
    %c0_12 = arith.constant 0 : index
    %c0_13 = arith.constant 0 : index
    %8 = vector.load %arg6[%c0_11, %c0_12, %c0_13] : memref<1x128x1xf32, #tpu.memory_space<vmem>>, vector<1x128x1xf32>
    %9 = vector.shape_cast %8 : vector<1x128x1xf32> to vector<128x1xf32>
    %cst = arith.constant 0.000000e+00 : f32
    %10 = vector.broadcast %cst : f32 to vector<128x1xf32>
    %11 = arith.addf %9, %10 : vector<128x1xf32>
    %cst_14 = arith.constant 0.000000e+00 : f32
    %12 = vector.broadcast %cst_14 : f32 to vector<128x1xf32>
    %13 = arith.subf %12, %11 : vector<128x1xf32>
    %14 = math.exp %13 : vector<128x1xf32>
    %cst_15 = arith.constant 2.000000e+00 : f32
    %15 = vector.broadcast %cst_15 : f32 to vector<128x1xf32>
    %16 = arith.mulf %15, %14 : vector<128x1xf32>
    %17 = vector.broadcast %16 : vector<128x1xf32> to vector<128x32xf32>
    %18 = arith.mulf %1, %17 : vector<128x32xf32>
    %cst_16 = arith.constant dense<0.000000e+00> : vector<128x128xf32>
    %19 = tpu.matmul %18, %3, %cst_16 {dimension_numbers = #tpu.dot_dimension_numbers<[1], [0], [0], [1], [0, 0, 1, 1], [], []>} : vector<128x32xf32>, vector<32x128xf32>, vector<128x128xf32> -> vector<128x128xf32>
    %20 = vector.broadcast %14 : vector<128x1xf32> to vector<128x128xf32>
    %21 = vector.broadcast %7 : vector<1x128xf32> to vector<128x128xf32>
    %22 = arith.mulf %20, %21 : vector<128x128xf32>
    %23 = arith.subf %19, %22 : vector<128x128xf32>
    %cst_17 = arith.constant dense<0xFF800000> : vector<128xf32>
    %24 = vector.multi_reduction <maximumf>, %23, %cst_17 [1] : vector<128x128xf32> to vector<128xf32>
    %25 = vector.shape_cast %24 : vector<128xf32> to vector<128x1xf32>
    %26 = vector.broadcast %25 : vector<128x1xf32> to vector<128x128xf32>
    %27 = arith.subf %23, %26 : vector<128x128xf32>
    %28 = math.exp %27 : vector<128x128xf32>
    %cst_18 = arith.constant dense<0.000000e+00> : vector<128xf32>
    %29 = vector.multi_reduction <add>, %28, %cst_18 [1] : vector<128x128xf32> to vector<128xf32>
    %30 = vector.shape_cast %29 : vector<128xf32> to vector<128x1xf32>
    %31 = tpu.reciprocal %30 {approx = true} : vector<128x1xf32> -> vector<128x1xf32>
    %32 = vector.broadcast %31 : vector<128x1xf32> to vector<128x128xf32>
    %33 = arith.mulf %28, %32 : vector<128x128xf32>
    %cst_19 = arith.constant dense<0.000000e+00> : vector<128x32xf32>
    %34 = tpu.matmul %33, %5, %cst_19 {dimension_numbers = #tpu.dot_dimension_numbers<[1], [0], [0], [1], [0, 0, 1, 1], [], []>} : vector<128x128xf32>, vector<128x32xf32>, vector<128x32xf32> -> vector<128x32xf32>
    %cst_20 = arith.constant 1.000000e+00 : f32
    %35 = vector.broadcast %cst_20 : f32 to vector<128x128xf32>
    %36 = arith.subf %35, %33 : vector<128x128xf32>
    %cst_21 = arith.constant 1.000000e-07 : f32
    %37 = vector.broadcast %cst_21 : f32 to vector<128x128xf32>
    %38 = arith.maximumf %36, %37 : vector<128x128xf32>
    %39 = arith.mulf %28, %38 : vector<128x128xf32>
    %cst_22 = arith.constant dense<0.000000e+00> : vector<128xf32>
    %40 = vector.multi_reduction <add>, %39, %cst_22 [1] : vector<128x128xf32> to vector<128xf32>
    %41 = vector.shape_cast %40 : vector<128xf32> to vector<128x1xf32>
    %42 = tpu.reciprocal %41 {approx = true} : vector<128x1xf32> -> vector<128x1xf32>
    %43 = vector.broadcast %42 : vector<128x1xf32> to vector<128x128xf32>
    %44 = arith.mulf %39, %43 : vector<128x128xf32>
    %cst_23 = arith.constant dense<0.000000e+00> : vector<128x32xf32>
    %45 = tpu.matmul %44, %5, %cst_23 {dimension_numbers = #tpu.dot_dimension_numbers<[1], [0], [0], [1], [0, 0, 1, 1], [], []>} : vector<128x128xf32>, vector<128x32xf32>, vector<128x32xf32> -> vector<128x32xf32>
    %cst_24 = arith.constant 1.000000e+00 : f32
    %46 = vector.broadcast %cst_24 : f32 to vector<128x128xf32>
    %47 = arith.subf %46, %44 : vector<128x128xf32>
    %cst_25 = arith.constant 1.000000e-07 : f32
    %48 = vector.broadcast %cst_25 : f32 to vector<128x128xf32>
    %49 = arith.maximumf %47, %48 : vector<128x128xf32>
    %50 = arith.mulf %39, %49 : vector<128x128xf32>
    %cst_26 = arith.constant dense<0.000000e+00> : vector<128xf32>
    %51 = vector.multi_reduction <add>, %50, %cst_26 [1] : vector<128x128xf32> to vector<128xf32>
    %52 = vector.shape_cast %51 : vector<128xf32> to vector<128x1xf32>
    %53 = tpu.reciprocal %52 {approx = true} : vector<128x1xf32> -> vector<128x1xf32>
    %54 = vector.broadcast %53 : vector<128x1xf32> to vector<128x128xf32>
    %55 = arith.mulf %50, %54 : vector<128x128xf32>
    %cst_27 = arith.constant dense<0.000000e+00> : vector<128x32xf32>
    %56 = tpu.matmul %55, %5, %cst_27 {dimension_numbers = #tpu.dot_dimension_numbers<[1], [0], [0], [1], [0, 0, 1, 1], [], []>} : vector<128x128xf32>, vector<128x32xf32>, vector<128x32xf32> -> vector<128x32xf32>
    %cst_28 = arith.constant 1.000000e+00 : f32
    %57 = vector.broadcast %cst_28 : f32 to vector<128x128xf32>
    %58 = arith.subf %57, %55 : vector<128x128xf32>
    %cst_29 = arith.constant 1.000000e-07 : f32
    %59 = vector.broadcast %cst_29 : f32 to vector<128x128xf32>
    %60 = arith.maximumf %58, %59 : vector<128x128xf32>
    %61 = arith.mulf %50, %60 : vector<128x128xf32>
    %cst_30 = arith.constant dense<0.000000e+00> : vector<128xf32>
    %62 = vector.multi_reduction <add>, %61, %cst_30 [1] : vector<128x128xf32> to vector<128xf32>
    %63 = vector.shape_cast %62 : vector<128xf32> to vector<128x1xf32>
    %64 = tpu.reciprocal %63 {approx = true} : vector<128x1xf32> -> vector<128x1xf32>
    %65 = vector.broadcast %64 : vector<128x1xf32> to vector<128x128xf32>
    %66 = arith.mulf %61, %65 : vector<128x128xf32>
    %cst_31 = arith.constant dense<0.000000e+00> : vector<128x32xf32>
    %67 = tpu.matmul %66, %5, %cst_31 {dimension_numbers = #tpu.dot_dimension_numbers<[1], [0], [0], [1], [0, 0, 1, 1], [], []>} : vector<128x128xf32>, vector<128x32xf32>, vector<128x32xf32> -> vector<128x32xf32>
    %68 = tpu.concatenate %34, %45, %56, %67 in 1 : vector<128x32xf32>, vector<128x32xf32>, vector<128x32xf32>, vector<128x32xf32> -> vector<128x128xf32>
    %c0_32 = arith.constant 0 : index
    %c0_33 = arith.constant 0 : index
    %c0_34 = arith.constant 0 : index
    %69 = vector.load %arg7[%c0_32, %c0_33, %c0_34] : memref<1x128x128xf32, #tpu.memory_space<vmem>>, vector<1x128x128xf32>
    %70 = vector.shape_cast %69 : vector<1x128x128xf32> to vector<128x128xf32>
    %71 = vector.shape_cast %68 : vector<128x128xf32> to vector<1x128x128xf32>
    tpu.vector_store %arg7[%c0_32, %c0_33, %c0_34], %71 {strides = array<i32>} : memref<1x128x128xf32, #tpu.memory_space<vmem>>, vector<1x128x128xf32>,
    return
  }
  func.func @transform_0(%arg0: i32, %arg1: i32) -> (i32, i32, i32) {
    %c0_i32 = arith.constant 0 : i32
    %c0_i32_0 = arith.constant 0 : i32
    return %arg0, %arg1, %c0_i32 : i32, i32, i32
  }
  func.func @transform_1(%arg0: i32, %arg1: i32) -> (i32, i32, i32) {
    %c0_i32 = arith.constant 0 : i32
    %c0_i32_0 = arith.constant 0 : i32
    %c0_i32_1 = arith.constant 0 : i32
    return %arg0, %c0_i32, %c0_i32_0 : i32, i32, i32
  }
  func.func @transform_2(%arg0: i32, %arg1: i32) -> (i32, i32, i32) {
    %c0_i32 = arith.constant 0 : i32
    %c0_i32_0 = arith.constant 0 : i32
    %c0_i32_1 = arith.constant 0 : i32
    return %arg0, %c0_i32, %c0_i32_0 : i32, i32, i32
  }
  func.func @transform_3(%arg0: i32, %arg1: i32) -> (i32, i32, i32) {
    %c0_i32 = arith.constant 0 : i32
    %c0_i32_0 = arith.constant 0 : i32
    %c0_i32_1 = arith.constant 0 : i32
    return %arg0, %c0_i32, %c0_i32_0 : i32, i32, i32
  }
  func.func @transform_4(%arg0: i32, %arg1: i32) -> (i32, i32, i32) {
    %c0_i32 = arith.constant 0 : i32
    %c0_i32_0 = arith.constant 0 : i32
    return %arg0, %arg1, %c0_i32 : i32, i32, i32
  }
  func.func @transform_5(%arg0: i32, %arg1: i32) -> (i32, i32, i32) {
    %c0_i32 = arith.constant 0 : i32
    %c0_i32_0 = arith.constant 0 : i32
    return %arg0, %arg1, %c0_i32 : i32, i32, i32
  }
}

</mosaic_0001>

<bundles_post_ra>
// kernel: tpu_custom_call.1
= control target key start
LH: loop header
LB: loop body
LE: loop exit
PB: predicated region body
PF: predicated region fallthrough
CT: control target
= control target key end

     0   :  { %10 = vsyncpa [#allocation3], 0  ;;  %s3212_s0 = inlined_call_operand.vmem [shape: f32[2,128,32], index: 0, kind: input, shape index: {}]   ;;  %s3213_s1 = inlined_call_operand.vmem [shape: f32[2,32,128], index: 1, kind: input, shape index: {}]   ;;  %s3214_s2 = inlined_call_operand.vmem [shape: f32[2,128,32], index: 2, kind: input, shape index: {}]   ;;  %s3215_s3 = inlined_call_operand.vmem [shape: f32[2,1,128], index: 3, kind: input, shape index: {}]   ;;  %s3216_s4 = inlined_call_operand.vmem [shape: f32[2,128,1], index: 4, kind: input, shape index: {}]   ;;  %s3217_s5 = inlined_call_operand.hbm [shape: f32[2,128,128], index: 5, kind: output, shape index: {}]  }
   0x1   :  { %12 = vsyncpa [#allocation3 + $0x1], 0  ;;  %s2373_s18 = smov 0   ;;  %s2375_s19 = smov 0  }
   0x2   :  { %s2377_s20 = smov 0   ;;  %s2379_s21 = smov 0  }
   0x3   :  { %s2381_s22 = smov 0   ;;  %s2383_s23 = smov 0  }
   0x4 LB: > { %s1948_s24 = sadd.s32 4294967295, %s2335_s23   ;;  %s1949_s25 = sadd.s32 4294967294, %s2335_s23   ;;  %s2335_s23 = sphi %s2383_s23, %s18_s23   ;;  %s2331_s22 = sphi %s2381_s22, %s3224_s22   ;;  %s2327_s21 = sphi %s2379_s21, %s3223_s21   ;;  %s2323_s20 = sphi %s2377_s20, %s3222_s20   ;;  %s2319_s19 = sphi %s2375_s19, %s3221_s19   ;;  %s2315_s18 = sphi %s2373_s18, %s3220_s18  }
   0x5   : > { %s30_s26 = sadd.s32 1, %s2331_s22  ;;  %s173_s27 = sadd.s32 1, %s2323_s20 }
   0x6   : > { %p32_p0 = scmp.ge.s32.totalorder %s30_s26, 2  ;;  %p183_p1 = scmp.ne.s32.totalorder %s2323_s20, %s2319_s19 }
   0x7   : > { %p184_p2 = scmp.eq.s32.totalorder %s1948_s24, 1  ;;  %p189_p3 = scmp.ne.s32.totalorder %s2319_s19, %s2315_s18 }
   0x8   : > { %s3226_s26 = smov (%p32_p0, %s30_s26), 0  ;;  %p190_p5 = scmp.eq.s32.totalorder %s1949_s25, 1 }
   0x9   : > { %p2413_p4 = por %p184_p2, %p183_p1  ;;  %s168_s29 = ssub.s32 %s2331_s22, %s3226_s26 }
   0xa   : > { %p1952_p6 = scmp.ge.s32.totalorder %s2335_s23, 1  ;;  %p171_p7 = scmp.eq.s32.totalorder %s168_s29, 0 }
   0xb   : > { %p2420_p8 = por %p190_p5, %p189_p3  ;;  %p256_p9 = scmp.lt.s32.totalorder %s2335_s23, 3 }
   0xc   : > { %s2426_s6 = scalar_select %p171_p7, %s2323_s20, %s173_s27  }
   0xd   : > { %p257_p10 = pnand %p1952_p6, %p256_p9 }
   0xe   : > { %p311_p11 = scmp.lt.s32.totalorder (!%p257_p10), %s2327_s21, 1  ;;  %s2339_s13 = smov (!%p257_p10), 64  }
   0xf   : > { %260 = sbr.rel (%p257_p10) target bundleno = 1450 (0x5aa), region = 40 }
  0x14   : > { %v2337_v0 = vmov 0   ;;  %s2430_s7 = scalar_select %p311_p11, %s2327_s21, 1  ;;  %vm573_vm0 = vcmask 261120   ;;  %vm1750_vm1 = vcmask 523264   ;;  %vm1767_vm2 = vcmask 785408  }
  0x15   : > { %2063 = vset.pattern.permute.xlu2 %v2337_v0  ;;  %2062 = vset.pattern.permute.xlu1 %v2337_v0 }
  0x16   : > { %2061 = vset.pattern.permute.xlu0 %v2337_v0  ;;  %s2433_s8 = sshll.u32 %s2430_s7, 7  ;;  %s332_s11 = scalar_lea.vmem %s3215_s3, %s2430_s7 }
  0x17   : > { %s2443_s14 = scalar_lea.vmem %s3216_s4, %s2433_s8  ;;  %s1984_s15 = sshll.u32 %s2430_s7, 5 }
  0x18   : > { %v385_v1 = vld [vmem:[%s2443_s14 + $0x20] sm:$0xff]  ;;  %v383_v2 = vld [vmem:[%s2443_s14 + $0x10] sm:$0xff]  ;;  %v386_v7 = vld [vmem:[%s2443_s14 + $0x28] sm:$0xff]  ;;  %s324_s24 = scalar_lea.vmem %s3213_s1, %s1984_s15  ;;  %s2523_s29 = scalar_lea.vmem %s3212_s0, %s2433_s8 }
  0x19   : > { %v381_v3 = vld [vmem:[%s2443_s14] sm:$0xff]  ;;  %v417_v4 = vsub.f32 0.0, %v385_v1  ;;  %v415_v5 = vsub.f32 0.0, %v383_v2  ;;  %v384_v8 = vld [vmem:[%s2443_s14 + $0x18] sm:$0xff]  ;;  %v382_v9 = vld [vmem:[%s2443_s14 + $0x8] sm:$0xff]  ;;  %v418_v10 = vsub.f32 0.0, %v386_v7  ;;  %s2638_s12 = scalar_lea.vmem %s3214_s2, %s2433_s8 }
  0x1a   : > { %v413_v6 = vsub.f32 0.0, %v381_v3  ;;  %v416_v11 = vsub.f32 0.0, %v384_v8  ;;  %v414_v12 = vsub.f32 0.0, %v382_v9  ;;  %v389_v18 = vld [vmem:[%s2443_s14 + $0x40] sm:$0xff]  ;;  %v388_v20 = vld [vmem:[%s2443_s14 + $0x38] sm:$0xff]  ;;  %v387_v21 = vld [vmem:[%s2443_s14 + $0x30] sm:$0xff] }
  0x1b   : > { %v437_v13 = vmul.f32 1.442695, %v417_v4  ;;  %v433_v14 = vmul.f32 1.442695, %v415_v5  ;;  %v439_v16 = vmul.f32 1.442695, %v418_v10 }
  0x1c   : > { %v429_v15 = vmul.f32 1.442695, %v413_v6  ;;  %v435_v17 = vmul.f32 1.442695, %v416_v11  ;;  %v431_v19 = vmul.f32 1.442695, %v414_v12 }
  0x1d   : > { %2065 = vpow2.f32 %v437_v13  ;;  %v421_v22 = vsub.f32 0.0, %v389_v18  ;;  %v420_v23 = vsub.f32 0.0, %v388_v20  ;;  %v419_v25 = vsub.f32 0.0, %v387_v21  ;;  %v392_v33 = vld [vmem:[%s2443_s14 + $0x58] sm:$0xff]  ;;  %v391_v36 = vld [vmem:[%s2443_s14 + $0x50] sm:$0xff]  ;;  %v390_v38 = vld [vmem:[%s2443_s14 + $0x48] sm:$0xff] }
  0x1e   : > { %2067 = vpow2.f32 %v433_v14  ;;  %v424_v40 = vsub.f32 0.0, %v392_v33  ;;  %v423_v42 = vsub.f32 0.0, %v391_v36  ;;  %v422_v44 = vsub.f32 0.0, %v390_v38  ;;  %v395_v48 = vld [vmem:[%s2443_s14 + $0x70] sm:$0xff]  ;;  %v394_v51 = vld [vmem:[%s2443_s14 + $0x68] sm:$0xff]  ;;  %v393_v53 = vld [vmem:[%s2443_s14 + $0x60] sm:$0xff] }
  0x1f   : > { %2069 = vpow2.f32 %v429_v15  ;;  %v445_v30 = vmul.f32 1.442695, %v421_v22  ;;  %v443_v32 = vmul.f32 1.442695, %v420_v23  ;;  %v441_v35 = vmul.f32 1.442695, %v419_v25 }
  0x20   : > { %2071 = vpow2.f32 %v439_v16  ;;  %v451_v46 = vmul.f32 1.442695, %v424_v40  ;;  %v449_v47 = vmul.f32 1.442695, %v423_v42  ;;  %v447_v50 = vmul.f32 1.442695, %v422_v44 }
  0x21   : > { %2073 = vpow2.f32 %v435_v17  ;;  %v427_v55 = vsub.f32 0.0, %v395_v48  ;;  %v426_v57 = vsub.f32 0.0, %v394_v51  ;;  %v425_v59 = vsub.f32 0.0, %v393_v53  ;;  %v396_v2 = vld [vmem:[%s2443_s14 + $0x78] sm:$0xff]  ;;  %v362_v18 = vld [vmem:[%s324_s24 + $0x10] sm:$0xff]  ;;  %v360_v20 = vld [vmem:[%s324_s24] sm:$0xff] }
  0x22   : > { %2075 = vpow2.f32 %v431_v19  ;;  %v428_v6 = vsub.f32 0.0, %v396_v2  ;;  %v363_v17 = vld [vmem:[%s324_s24 + $0x18] sm:$0xff]  ;;  %v361_v19 = vld [vmem:[%s324_s24 + $0x8] sm:$0xff]  ;;  %v348_v21 = vld [vmem:[%s2523_s29 + $0x20] sm:$0xff]  ;;  %s2338_s8 = smov 32   ;;  %s2340_s14 = smov 96  }
  0x23   : > { %v2454_v24 = vpop.eup %2065  ;;  %2077 = vpow2.f32 %v445_v30  ;;  %v457_v61 = vmul.f32 1.442695, %v427_v55  ;;  %v455_v62 = vmul.f32 1.442695, %v426_v57  ;;  %v453_v0 = vmul.f32 1.442695, %v425_v59  ;;  %1988 = vmatpush.msra.mxu1 %v363_v17  ;;  %634 = vmatpush.msra.mxu0 %v363_v17 }
  0x24   : > { %v2456_v26 = vpop.eup %2067  ;;  %v465_v27 = vmul.f32 2.0, %v2454_v24  ;;  %2079 = vpow2.f32 %v443_v32  ;;  %v459_v9 = vmul.f32 1.442695, %v428_v6  ;;  %1990 = vmatpush.msra.mxu3 %v363_v17  ;;  %1989 = vmatpush.msra.mxu2 %v363_v17  ;;  %v358_v33 = vld [vmem:[%s2523_s29 + $0x70] sm:$0xff]  ;;  %v353_v48 = vld [vmem:[%s2523_s29 + $0x48] sm:$0xff]  ;;  %v359_v59 = vld [vmem:[%s2523_s29 + $0x78] sm:$0xff] }
  0x25   : > { %v2459_v28 = vpop.eup %2069  ;;  %v463_v29 = vmul.f32 2.0, %v2456_v26  ;;  %2081 = vpow2.f32 %v441_v35  ;;  %1991 = vmatpush.msra.mxu1 %v362_v18  ;;  %635 = vmatpush.msra.mxu0 %v362_v18  ;;  %v345_v35 = vld [vmem:[%s2523_s29 + $0x8] sm:$0xff]  ;;  %v346_v40 = vld [vmem:[%s2523_s29 + $0x10] sm:$0xff]  ;;  %v356_v2 = vld [vmem:[%s2523_s29 + $0x60] sm:$0xff]  ;;  %s307_s15 = sand.u32 1, %s2319_s19   ;;  %s1987_s24 = sshll.u32 %s2327_s21, 7 }
  0x26   : > { %499 = vperm.xlu2 %2063, %v465_v27   ;;  %v461_v31 = vmul.f32 2.0, %v2459_v28  ;;  %v2464_v34 = vpop.eup %2071  ;;  %2083 = vpow2.f32 %v451_v46  ;;  %1993 = vmatpush.msra.mxu3 %v362_v18  ;;  %v351_v46 = vld [vmem:[%s2523_s29 + $0x38] sm:$0xff]  ;;  %v354_v53 = vld [vmem:[%s2523_s29 + $0x50] sm:$0xff]  ;;  %s1953_s16 = sshll.u32 %s307_s15, 7  ;;  %s1801_s7 = scalar_lea.sflag [#allocation3], %s307_s15 }
  0x27   : > { %489 = vperm.xlu1 %2062, %v463_v29   ;;  %v2467_v37 = vpop.eup %2073  ;;  %v466_v41 = vmul.f32 2.0, %v2464_v34  ;;  %2085 = vpow2.f32 %v449_v47  ;;  %1994 = vmatpush.msra.mxu1 %v361_v19  ;;  %v344_v29 = vld [vmem:[%s2523_s29] sm:$0xff]  ;;  %s3098_s17 = scalar_lea.vmem [#allocation2], %s1953_s16 }
  0x28   : > { %479 = vperm.xlu0 %2061, %v461_v31   ;;  %v2470_v39 = vpop.eup %2075  ;;  %v464_v43 = vmul.f32 2.0, %v2467_v37  ;;  %2087 = vpow2.f32 %v447_v50  ;;  %636 = vmatpush.msra.mxu0 %v361_v19  ;;  %s1815_s9 = sshll.u32 %s3098_s17, 4  ;;  %s1816_s9 = int_to_ptr.vmem [resolvable:$true] %s1815_s9 }
  0x29   : > { %v462_v45 = vmul.f32 2.0, %v2470_v39  ;;  %v2476_v49 = vpop.eup %2077  ;;  %2089 = vpow2.f32 %v457_v61  ;;  %1992 = vmatpush.msra.mxu2 %v362_v18  ;;  %1996 = vmatpush.msra.mxu3 %v361_v19 }
  0x2a   : > { %v2479_v52 = vpop.eup %2079  ;;  %v469_v56 = vmul.f32 2.0, %v2476_v49  ;;  %2091 = vpow2.f32 %v455_v62  ;;  %1997 = vmatpush.msra.mxu1 %v360_v20  ;;  %637 = vmatpush.msra.mxu0 %v360_v20 }
  0x2b   : > { %v2482_v54 = vpop.eup %2081  ;;  %v468_v58 = vmul.f32 2.0, %v2479_v52  ;;  %2093 = vpow2.f32 %v453_v0  ;;  %1995 = vmatpush.msra.mxu2 %v361_v19  ;;  %1999 = vmatpush.msra.mxu3 %v360_v20 }
  0x2c   : > { %v467_v60 = vmul.f32 2.0, %v2482_v54  ;;  %v2487_v63 = vpop.eup %2083  ;;  %2095 = vpow2.f32 %v459_v9 }
  0x2d   : > { %v2489_v1 = vpop.eup %2085  ;;  %v472_v4 = vmul.f32 2.0, %v2487_v63  ;;  %1998 = vmatpush.msra.mxu2 %v360_v20 }
  0x2e   : > { %504 = vperm.xlu2 %2063, %v466_v41   ;;  %v2088_v3 = vpop.eup %2087  ;;  %v471_v5 = vmul.f32 2.0, %v2489_v1  ;;  %v350_v41 = vld [vmem:[%s2523_s29 + $0x30] sm:$0xff] }
  0x2f   : > { %494 = vperm.xlu1 %2062, %v464_v43   ;;  %v470_v7 = vmul.f32 2.0, %v2088_v3  ;;  %v2494_v8 = vpop.eup %2089 }
  0x30   : > { %484 = vperm.xlu0 %2061, %v462_v45   ;;  %v2496_v10 = vpop.eup %2091  ;;  %v475_v12 = vmul.f32 2.0, %v2494_v8  ;;  %v347_v45 = vld [vmem:[%s2523_s29 + $0x18] sm:$0xff] }
  0x31   : > { %v2498_v11 = vpop.eup %2093  ;;  %v474_v13 = vmul.f32 2.0, %v2496_v10 }
  0x32   : > { %v473_v14 = vmul.f32 2.0, %v2498_v11  ;;  %v2504_v15 = vpop.eup %2095 }
  0x33   : > { %v476_v16 = vmul.f32 2.0, %v2504_v15 }
  0x36   : > { %519 = vperm.xlu2 %2063, %v469_v56  }
  0x37   : > { %514 = vperm.xlu1 %2062, %v468_v58  }
  0x38   : > { %509 = vperm.xlu0 %2061, %v467_v60   ;;  %v355_v60 = vld [vmem:[%s2523_s29 + $0x58] sm:$0xff] }
  0x3e   : > { %534 = vperm.xlu2 %2063, %v472_v4   ;;  %v357_v4 = vld [vmem:[%s2523_s29 + $0x68] sm:$0xff] }
  0x3f   : > { %529 = vperm.xlu1 %2062, %v471_v5  }
  0x40   : > { %524 = vperm.xlu0 %2061, %v470_v7  }
  0x46   : > { %549 = vperm.xlu2 %2063, %v475_v12   ;;  %v2562_v12 = vld [vmem:[%s332_s11] ss:$0 sm:$0xff] }
  0x47   : > { %544 = vperm.xlu1 %2062, %v474_v13  }
  0x48   : > { %539 = vperm.xlu0 %2061, %v473_v14  }
  0x4e   : > { %694 = vperm.xlu2 %2063, %v2470_v39  }
  0x4f   : > { %689 = vperm.xlu1 %2062, %v2459_v28  }
  0x50   : > { %554 = vperm.xlu0 %2061, %v476_v16  }
  0x56   : > { %709 = vperm.xlu2 %2063, %v2454_v24   ;;  %v349_v24 = vld [vmem:[%s2523_s29 + $0x28] sm:$0xff] }
  0x57   : > { %704 = vperm.xlu1 %2062, %v2467_v37  }
  0x58   : > { %699 = vperm.xlu0 %2061, %v2456_v26  }
  0x5e   : > { %719 = vperm.xlu2 %2063, %v2482_v54   ;;  %v352_v54 = vld [vmem:[%s2523_s29 + $0x40] sm:$0xff]  ;;  %s1814_s29 = scalar_lea.hbm %s3217_s5, %s1987_s24 }
  0x5f   : > { %729 = vperm.xlu1 %2062, %v2476_v49   ;;  %s1817_s10 = sshll.u32 %s1814_s29, 4  ;;  %s1818_s10 = int_to_ptr.hbm [resolvable:$true] %s1817_s10 }
  0x60   : > { %714 = vperm.xlu0 %2061, %v2464_v34   ;;  %s2271_s11 = sshra.s32 %s1818_s10, 4  ;;  %s2272_s11 = int_to_ptr.hbm [resolvable:$true] %s2271_s11 }
  0x61   : > { %p2278_p1 = scmp.lt.s32.totalorder %s2272_s11, %s3217_s5 }
  0x66   : > { %724 = vperm.xlu2 %2063, %v2479_v52  }
  0x6e   : > { %734 = vperm.xlu2 %2063, %v2088_v3  }
  0x80   : > { %v500_v22 = vpop.permute.xlu2 %499 }
  0x81   : > { %v561_v23 = vmul.f32 %v500_v22, %v348_v21 }
  0x83   : > { %1966 = vmatmul.msk.f32.vlgmr.msra.gmra.mxu1 %vm573_vm0, %v561_v23 }
  0x88   : > { %v505_v25 = vpop.permute.xlu2 %504 }
  0x89   : > { %v562_v26 = vmul.f32 %v505_v25, %v349_v24 }
  0x8b   : > { %1967 = vmatmul.msk.f32.gmra.mxu1 %vm573_vm0, %v562_v26 }
  0x90   : > { %v520_v27 = vpop.permute.xlu2 %519 }
  0x91   : > { %v565_v58 = vmul.f32 %v520_v27, %v352_v54 }
  0x98   : > { %v535_v28 = vpop.permute.xlu2 %534 }
  0x99   : > { %v490_v31 = vpop.permute.xlu1 %489  ;;  %v568_v0 = vmul.f32 %v535_v28, %v355_v60 }
  0x9a   : > { %v480_v30 = vpop.permute.xlu0 %479  ;;  %v559_v42 = vmul.f32 %v490_v31, %v346_v40 }
  0x9b   : > { %v557_v32 = vmul.f32 %v480_v30, %v344_v29 }
  0x9d   : > { %1962 = vmatmul.msk.f32.vlgmr.msra.gmra.mxu0 %vm573_vm0, %v557_v32 }
  0xa0   : > { %v550_v34 = vpop.permute.xlu2 %549 }
  0xa1   : > { %v571_v36 = vmul.f32 %v550_v34, %v358_v33  ;;  %v495_v39 = vpop.permute.xlu1 %494 }
  0xa2   : > { %v485_v37 = vpop.permute.xlu0 %484  ;;  %v560_v49 = vmul.f32 %v495_v39, %v347_v45 }
  0xa3   : > { %v558_v38 = vmul.f32 %v485_v37, %v345_v35  ;;  %1976 = vmatmul.msk.f32.vlgmr.msra.gmra.mxu3 %vm573_vm0, %v571_v36 }
  0xa5   : > { %1963 = vmatmul.msk.f32.gmra.mxu0 %vm573_vm0, %v558_v38 }
  0xa8   : > { %v695_v7 = vpop.permute.xlu2 %694 }
  0xa9   : > { %v515_v47 = vpop.permute.xlu1 %514  ;;  %v771_v24 = vmul.f32 %v2562_v12, %v695_v7 }
  0xaa   : > { %v510_v43 = vpop.permute.xlu0 %509  ;;  %v564_v50 = vmul.f32 %v515_v47, %v351_v46 }
  0xab   : > { %v563_v44 = vmul.f32 %v510_v43, %v350_v41 }
  0xad   : > { %1964 = vmatmul.msk.f32.gmra.mxu0 %vm573_vm0, %v559_v42  ;;  %1968 = vmatmul.msk.f32.gmra.mxu1 %vm573_vm0, %v563_v44 }
  0xb0   : > { %v710_v9 = vpop.permute.xlu2 %709 }
  0xb1   : > { %v530_v55 = vpop.permute.xlu1 %529  ;;  %v774_v13 = vmul.f32 %v2562_v12, %v710_v9 }
  0xb2   : > { %v525_v51 = vpop.permute.xlu0 %524  ;;  %v567_v56 = vmul.f32 %v530_v55, %v354_v53 }
  0xb3   : > { %v566_v52 = vmul.f32 %v525_v51, %v353_v48 }
  0xb5   : > { %1965 = vmatmul.msk.f32.gmra.mxu0 %vm573_vm0, %v560_v49  ;;  %1969 = vmatmul.msk.f32.gmra.mxu1 %vm573_vm0, %v564_v50 }
  0xb6   : > { %1971 = vmatmul.msk.f32.vlgmr.msra.gmra.mxu2 %vm573_vm0, %v566_v52 }
  0xb8   : > { %v720_v36 = vpop.permute.xlu2 %719 }
  0xb9   : > { %v545_v5 = vpop.permute.xlu1 %544  ;;  %v776_v38 = vmul.f32 %v2562_v12, %v720_v36 }
  0xba   : > { %v540_v57 = vpop.permute.xlu0 %539  ;;  %v570_v6 = vmul.f32 %v545_v5, %v357_v4 }
  0xbb   : > { %v569_v3 = vmul.f32 %v540_v57, %v356_v2 }
  0xbd   : > { %1970 = vmatmul.msk.f32.gmra.mxu1 %vm573_vm0, %v565_v58 }
  0xbe   : > { %1972 = vmatmul.msk.f32.gmra.mxu2 %vm573_vm0, %v567_v56 }
  0xc0   : > { %v725_v40 = vpop.permute.xlu2 %724 }
  0xc1   : > { %v690_v18 = vpop.permute.xlu1 %689 }
  0xc2   : > { %v555_v61 = vpop.permute.xlu0 %554  ;;  %v770_v19 = vmul.f32 %v2562_v12, %v690_v18 }
  0xc3   : > { %v572_v62 = vmul.f32 %v555_v61, %v359_v59 }
  0xc5   : > { %1977 = vmatmul.msk.f32.gmra.mxu3 %vm573_vm0, %v572_v62 }
  0xc6   : > { %1973 = vmatmul.msk.f32.gmra.mxu2 %vm573_vm0, %v568_v0 }
  0xc8   : > { %v735_v42 = vpop.permute.xlu2 %734 }
  0xc9   : > { %v705_v32 = vpop.permute.xlu1 %704  ;;  %v779_v44 = vmul.f32 %v2562_v12, %v735_v42  ;;  %v367_v42 = vld [vmem:[%s2638_s12 + $0x18] sm:$0xff] }
  0xca   : > { %v700_v17 = vpop.permute.xlu0 %699  ;;  %v773_v33 = vmul.f32 %v2562_v12, %v705_v32  ;;  %v376_v32 = vld [vmem:[%s2638_s12 + $0x60] sm:$0xff] }
  0xcb   : > { %v772_v29 = vmul.f32 %v2562_v12, %v700_v17 }
  0xce   : > { %1974 = vmatmul.msk.f32.gmra.mxu2 %vm573_vm0, %v569_v3 }
  0xd2   : > { %v715_v22 = vpop.permute.xlu0 %714 }
  0xd3   : > { %v775_v25 = vmul.f32 %v2562_v12, %v715_v22 }
  0xd6   : > { %1975 = vmatmul.msk.f32.gmra.mxu2 %vm573_vm0, %v570_v6 }
 0x100   : > { %v651_v14 = vpop.f32.mrf.mxu1 }
 0x101   : > { %v2565_v16 = vsub.f32 %v651_v14, %v774_v13 }
 0x103   : > { %810 = vmax.xlane.f32.xlu0 %v2565_v16 }
 0x108   : > { %v654_v23 = vpop.f32.mrf.mxu1 }
 0x109   : > { %v2571_v27 = vsub.f32 %v654_v23, %v775_v25 }
 0x11a   : > { %v639_v20 = vpop.f32.mrf.mxu0 }
 0x11b   : > { %v786_v21 = vsub.f32 %v639_v20, %v770_v19 }
 0x11d   : > { %802 = vmax.xlane.f32.xlu1 %v786_v21 }
 0x122   : > { %v642_v26 = vpop.f32.mrf.mxu0 }
 0x123   : > { %v787_v28 = vsub.f32 %v642_v26, %v771_v24 }
 0x125   : > { %812 = vmax.xlane.f32.xlu1 %v2571_v27  ;;  %804 = vmax.xlane.f32.xlu0 %v787_v28 }
 0x12a   : > { %v645_v30 = vpop.f32.mrf.mxu0  ;;  %v657_v37 = vpop.f32.mrf.mxu1 }
 0x12b   : > { %v788_v31 = vsub.f32 %v645_v30, %v772_v29  ;;  %v2583_v39 = vsub.f32 %v657_v37, %v776_v38  ;;  %v379_v29 = vld [vmem:[%s2638_s12 + $0x78] sm:$0xff]  ;;  %v378_v30 = vld [vmem:[%s2638_s12 + $0x70] sm:$0xff]  ;;  %v372_v37 = vld [vmem:[%s2638_s12 + $0x40] sm:$0xff] }
 0x12c   : > { %946 = vmatpush.msrb.mxu1 %v379_v29  ;;  %1123 = vmatpush.msrb.mxu2 %v379_v29 }
 0x12d   : > { %806 = vmax.xlane.f32.xlu2 %v788_v31  ;;  %1300 = vmatpush.msrb.mxu3 %v379_v29 }
 0x12e   : > { %1477 = vmatpush.msrb.mxu0 %v379_v29  ;;  %947 = vmatpush.msrb.mxu1 %v378_v30 }
 0x12f   : > { %1124 = vmatpush.msrb.mxu2 %v378_v30  ;;  %1301 = vmatpush.msrb.mxu3 %v378_v30 }
 0x130   : > { %1478 = vmatpush.msrb.mxu0 %v378_v30 }
 0x132   : > { %v648_v34 = vpop.f32.mrf.mxu0 }
 0x133   : > { %v789_v35 = vsub.f32 %v648_v34, %v773_v33  ;;  %v375_v33 = vld [vmem:[%s2638_s12 + $0x58] sm:$0xff]  ;;  %v374_v34 = vld [vmem:[%s2638_s12 + $0x50] sm:$0xff] }
 0x135   : > { %808 = vmax.xlane.f32.xlu0 %v789_v35 }
 0x139   : > { %v666_v43 = vpop.f32.mrf.mxu2 }
 0x13a   : > { %v2595_v45 = vsub.f32 %v666_v43, %v779_v44 }
 0x13e   : > { %749 = vperm.xlu1 %2062, %v2498_v11   ;;  %v660_v11 = vpop.f32.mrf.mxu1 }
 0x141   : > { %v669_v54 = vpop.f32.mrf.mxu2 }
 0x145   : > { %744 = vperm.xlu2 %2063, %v2487_v63   ;;  %v777_v63 = vmul.f32 %v2562_v12, %v725_v40  ;;  %v371_v40 = vld [vmem:[%s2638_s12 + $0x38] sm:$0xff] }
 0x146   : > { %754 = vperm.xlu1 %2062, %v2496_v10  }
 0x147   : > { %v2587_v41 = vsub.f32 %v660_v11, %v777_v63  ;;  %v370_v63 = vld [vmem:[%s2638_s12 + $0x30] sm:$0xff] }
 0x149   : > { %739 = vperm.xlu0 %2061, %v2489_v1   ;;  %v730_v1 = vpop.permute.xlu1 %729  ;;  %v672_v0 = vpop.f32.mrf.mxu2 }
 0x14a   : > { %v778_v10 = vmul.f32 %v2562_v12, %v730_v1  ;;  %v369_v1 = vld [vmem:[%s2638_s12 + $0x28] sm:$0xff] }
 0x14e   : > { %759 = vperm.xlu1 %2062, %v2494_v8   ;;  %v663_v8 = vpop.f32.mrf.mxu1 }
 0x151   : > { %v675_v22 = vpop.f32.mrf.mxu2 }
 0x156   : > { %764 = vperm.xlu1 %2062, %v2504_v15   ;;  %v2591_v15 = vsub.f32 %v663_v8, %v778_v10  ;;  %v368_v10 = vld [vmem:[%s2638_s12 + $0x20] sm:$0xff] }
 0x173   : > { %814 = vmax.xlane.f32.xlu0 %v2583_v39 }
 0x176   : > { %v811_v46 = vpop.xlane.xlu0 %810 }
 0x177   : > { %v838_v5 = vsub.f32 %v2565_v16, %v811_v46 }
 0x179   : > { %v858_v6 = vmul.f32 1.442695, %v838_v5 }
 0x17b   : > { %816 = vmax.xlane.f32.xlu0 %v2587_v41 }
 0x183   : > { %818 = vmax.xlane.f32.xlu0 %v2591_v15 }
 0x18b   : > { %820 = vmax.xlane.f32.xlu0 %v2595_v45 }
 0x190   : > { %v803_v47 = vpop.xlane.xlu1 %802 }
 0x191   : > { %v834_v48 = vsub.f32 %v786_v21, %v803_v47  ;;  %v366_v47 = vld [vmem:[%s2638_s12 + $0x10] sm:$0xff] }
 0x193   : > { %v850_v49 = vmul.f32 1.442695, %v834_v48  ;;  %v365_v48 = vld [vmem:[%s2638_s12 + $0x8] sm:$0xff] }
 0x195   : > { %2097 = vpow2.f32 %v850_v49 }
 0x198   : > { %v805_v50 = vpop.xlane.xlu0 %804  ;;  %v813_v7 = vpop.xlane.xlu1 %812 }
 0x199   : > { %v835_v51 = vsub.f32 %v787_v28, %v805_v50  ;;  %v839_v13 = vsub.f32 %v2571_v27, %v813_v7  ;;  %v678_v27 = vpop.f32.mrf.mxu2  ;;  %v681_v50 = vpop.f32.mrf.mxu3 }
 0x19b   : > { %v2598_v52 = vpop.eup %2097  ;;  %v852_v53 = vmul.f32 1.442695, %v835_v51  ;;  %v860_v20 = vmul.f32 1.442695, %v839_v13 }
 0x19c   : > { %882 = vadd.xlane.f32.xlu2 %v2598_v52 }
 0x19d   : > { %2099 = vpow2.f32 %v852_v53  ;;  %v364_v53 = vld [vmem:[%s2638_s12] sm:$0xff] }
 0x1a0   : > { %v807_v55 = vpop.xlane.xlu2 %806 }
 0x1a1   : > { %v836_v56 = vsub.f32 %v788_v31, %v807_v55  ;;  %v377_v31 = vld [vmem:[%s2638_s12 + $0x68] sm:$0xff] }
 0x1a2   : > { %948 = vmatpush.msrb.mxu1 %v377_v31  ;;  %1125 = vmatpush.msrb.mxu2 %v377_v31 }
 0x1a3   : > { %v854_v57 = vmul.f32 1.442695, %v836_v56  ;;  %v2601_v58 = vpop.eup %2099  ;;  %1302 = vmatpush.msrb.mxu3 %v377_v31  ;;  %1479 = vmatpush.msrb.mxu0 %v377_v31  ;;  %v684_v31 = vpop.f32.mrf.mxu3 }
 0x1a4   : > { %884 = vadd.xlane.f32.xlu2 %v2601_v58  ;;  %949 = vmatpush.msrb.mxu1 %v376_v32 }
 0x1a5   : > { %2101 = vpow2.f32 %v854_v57  ;;  %1126 = vmatpush.msrb.mxu2 %v376_v32  ;;  %1303 = vmatpush.msrb.mxu3 %v376_v32 }
 0x1a6   : > { %1480 = vmatpush.msrb.mxu0 %v376_v32  ;;  %950 = vmatpush.msrb.mxu1 %v375_v33 }
 0x1a7   : > { %1127 = vmatpush.msrb.mxu2 %v375_v33  ;;  %1304 = vmatpush.msrb.mxu3 %v375_v33 }
 0x1a8   : > { %v745_v59 = vpop.permute.xlu2 %744  ;;  %v809_v60 = vpop.xlane.xlu0 %808  ;;  %1481 = vmatpush.msrb.mxu0 %v375_v33  ;;  %951 = vmatpush.msrb.mxu1 %v374_v34 }
 0x1a9   : > { %v781_v61 = vmul.f32 %v2562_v12, %v745_v59  ;;  %v837_v62 = vsub.f32 %v789_v35, %v809_v60  ;;  %v373_v35 = vld [vmem:[%s2638_s12 + $0x48] sm:$0xff]  ;;  %1128 = vmatpush.msrb.mxu2 %v374_v34  ;;  %1305 = vmatpush.msrb.mxu3 %v374_v34  ;;  %s2273_s12 = scalar_lea.hbm %s2272_s11, 128 }
 0x1aa   : > { %1482 = vmatpush.msrb.mxu0 %v374_v34  ;;  %952 = vmatpush.msrb.mxu1 %v373_v35  ;;  %p2274_p12 = scmp.ne.s32.totalorder %s2272_s11, %s2273_s12 }
 0x1ab   : > { %v2605_v2 = vpop.eup %2101  ;;  %v856_v3 = vmul.f32 1.442695, %v837_v62  ;;  %v2607_v4 = vsub.f32 %v672_v0, %v781_v61  ;;  %1129 = vmatpush.msrb.mxu2 %v373_v35  ;;  %1306 = vmatpush.msrb.mxu3 %v373_v35 }
 0x1ac   : > { %886 = vadd.xlane.f32.xlu2 %v2605_v2  ;;  %1483 = vmatpush.msrb.mxu0 %v373_v35  ;;  %p2275_p13 = pnand %p2274_p12, %p2413_p4 }
 0x1ad   : > { %2103 = vpow2.f32 %v856_v3  ;;  %824 = vmax.xlane.f32.xlu1 %v2607_v4  ;;  %953 = vmatpush.msrb.mxu1 %v372_v37 }
 0x1ae   : > { %2105 = vpow2.f32 %v858_v6  ;;  %1130 = vmatpush.msrb.mxu2 %v372_v37  ;;  %1307 = vmatpush.msrb.mxu3 %v372_v37  ;;  %p2276_p0 = pneg %p2275_p13 }
 0x1af   : > { %2107 = vpow2.f32 %v860_v20  ;;  %1484 = vmatpush.msrb.mxu0 %v372_v37  ;;  %954 = vmatpush.msrb.mxu1 %v371_v40 }
 0x1b0   : > { %v750_v14 = vpop.permute.xlu1 %749  ;;  %1131 = vmatpush.msrb.mxu2 %v371_v40  ;;  %1308 = vmatpush.msrb.mxu3 %v371_v40 }
 0x1b1   : > { %v782_v21 = vmul.f32 %v2562_v12, %v750_v14  ;;  %1485 = vmatpush.msrb.mxu0 %v371_v40  ;;  %955 = vmatpush.msrb.mxu1 %v370_v63 }
 0x1b2   : > { %1132 = vmatpush.msrb.mxu2 %v370_v63  ;;  %1309 = vmatpush.msrb.mxu3 %v370_v63 }
 0x1b3   : > { %v2612_v9 = vpop.eup %2103  ;;  %v2624_v23 = vsub.f32 %v675_v22, %v782_v21  ;;  %1486 = vmatpush.msrb.mxu0 %v370_v63  ;;  %956 = vmatpush.msrb.mxu1 %v369_v1 }
 0x1b4   : > { %888 = vadd.xlane.f32.xlu2 %v2612_v9  ;;  %v2616_v18 = vpop.eup %2105  ;;  %1133 = vmatpush.msrb.mxu2 %v369_v1 }
 0x1b5   : > { %v2627_v25 = vpop.eup %2107  ;;  %1310 = vmatpush.msrb.mxu3 %v369_v1  ;;  %1487 = vmatpush.msrb.mxu0 %v369_v1 }
 0x1b6   : > { %957 = vmatpush.msrb.mxu1 %v368_v10  ;;  %1134 = vmatpush.msrb.mxu2 %v368_v10 }
 0x1b7   : > { %1311 = vmatpush.msrb.mxu3 %v368_v10  ;;  %1488 = vmatpush.msrb.mxu0 %v368_v10 }
 0x1b8   : > { %v755_v24 = vpop.permute.xlu1 %754  ;;  %958 = vmatpush.msrb.mxu1 %v367_v42  ;;  %1135 = vmatpush.msrb.mxu2 %v367_v42 }
 0x1b9   : > { %v783_v26 = vmul.f32 %v2562_v12, %v755_v24  ;;  %1312 = vmatpush.msrb.mxu3 %v367_v42  ;;  %1489 = vmatpush.msrb.mxu0 %v367_v42 }
 0x1ba   : > { %959 = vmatpush.msrb.mxu1 %v366_v47  ;;  %1136 = vmatpush.msrb.mxu2 %v366_v47 }
 0x1bb   : > { %v740_v17 = vpop.permute.xlu0 %739  ;;  %v2631_v28 = vsub.f32 %v678_v27, %v783_v26  ;;  %1313 = vmatpush.msrb.mxu3 %v366_v47  ;;  %1490 = vmatpush.msrb.mxu0 %v366_v47 }
 0x1bc   : > { %v780_v19 = vmul.f32 %v2562_v12, %v740_v17  ;;  %890 = vadd.xlane.f32.xlu2 %v2616_v18  ;;  %960 = vmatpush.msrb.mxu1 %v365_v48 }
 0x1bd   : > { %1137 = vmatpush.msrb.mxu2 %v365_v48  ;;  %1314 = vmatpush.msrb.mxu3 %v365_v48 }
 0x1be   : > { %v2620_v16 = vsub.f32 %v669_v54, %v780_v19  ;;  %961 = vmatpush.msrb.mxu1 %v364_v53  ;;  %1491 = vmatpush.msrb.mxu0 %v365_v48 }
 0x1bf   : > { %1138 = vmatpush.msrb.mxu2 %v364_v53  ;;  %1315 = vmatpush.msrb.mxu3 %v364_v53 }
 0x1c0   : > { %822 = vmax.xlane.f32.xlu0 %v2620_v16  ;;  %v760_v44 = vpop.permute.xlu1 %759  ;;  %1492 = vmatpush.msrb.mxu0 %v364_v53 }
 0x1c4   : > { %826 = vmax.xlane.f32.xlu2 %v2624_v23 }
 0x1c8   : > { %892 = vadd.xlane.f32.xlu0 %v2627_v25  ;;  %v765_v21 = vpop.permute.xlu1 %764 }
 0x1c9   : > { %v785_v27 = vmul.f32 %v2562_v12, %v765_v21 }
 0x1cb   : > { %v2688_v33 = vsub.f32 %v684_v31, %v785_v27 }
 0x1cc   : > { %828 = vmax.xlane.f32.xlu2 %v2631_v28 }
 0x1e6   : > { %v815_v36 = vpop.xlane.xlu0 %814 }
 0x1e7   : > { %v840_v38 = vsub.f32 %v2583_v39, %v815_v36 }
 0x1e9   : > { %v862_v11 = vmul.f32 1.442695, %v840_v38 }
 0x1eb   : > { %2109 = vpow2.f32 %v862_v11 }
 0x1ee   : > { %v817_v39 = vpop.xlane.xlu0 %816 }
 0x1ef   : > { %v841_v8 = vsub.f32 %v2587_v41, %v817_v39  ;;  %v784_v41 = vmul.f32 %v2562_v12, %v760_v44 }
 0x1f1   : > { %v2655_v43 = vpop.eup %2109  ;;  %v864_v46 = vmul.f32 1.442695, %v841_v8  ;;  %v2661_v51 = vsub.f32 %v681_v50, %v784_v41 }
 0x1f2   : > { %894 = vadd.xlane.f32.xlu0 %v2655_v43 }
 0x1f3   : > { %2111 = vpow2.f32 %v864_v46 }
 0x1f6   : > { %v819_v49 = vpop.xlane.xlu0 %818 }
 0x1f7   : > { %v842_v0 = vsub.f32 %v2591_v15, %v819_v49 }
 0x1f9   : > { %v2664_v54 = vpop.eup %2111  ;;  %v866_v7 = vmul.f32 1.442695, %v842_v0 }
 0x1fa   : > { %830 = vmax.xlane.f32.xlu0 %v2661_v51  ;;  %896 = vadd.xlane.f32.xlu2 %v2664_v54 }
 0x1fe   : > { %v821_v55 = vpop.xlane.xlu0 %820 }
 0x1ff   : > { %v843_v56 = vsub.f32 %v2595_v45, %v821_v55 }
 0x201   : > { %v868_v57 = vmul.f32 1.442695, %v843_v56 }
 0x203   : > { %2113 = vpow2.f32 %v868_v57 }
 0x209   : > { %v2669_v59 = vpop.eup %2113 }
 0x20a   : > { %900 = vadd.xlane.f32.xlu1 %v2669_v59 }
 0x20f   : > { %v883_v60 = vpop.xlane.xlu2 %882 }
 0x210   : > { %2115 = vrcp.f32 %v883_v60 }
 0x216   : > { %v2116_v61 = vpop.eup %2115 }
 0x217   : > { %v930_v62 = vmul.f32 %v2116_v61, %v2598_v52  ;;  %v885_v3 = vpop.xlane.xlu2 %884 }
 0x218   : > { %2117 = vrcp.f32 %v885_v3 }
 0x219   : > { %962 = vmatmul.f32.vlgmr.msrb.gmra.mxu1 %v930_v62  ;;  %v1011_v5 = vsub.f32 1.0, %v930_v62  ;;  %2119 = vpow2.f32 %v866_v7 }
 0x21b   : > { %v1027_v6 = vmax.f32 %v1011_v5, 1e-07 }
 0x21d   : > { %v2675_v45 = vmul.f32 %v2598_v52, %v1027_v6 }
 0x21e   : > { %v2118_v13 = vpop.eup %2117 }
 0x21f   : > { %1059 = vadd.xlane.f32.xlu0 %v2675_v45  ;;  %v887_v14 = vpop.xlane.xlu2 %886  ;;  %v931_v17 = vmul.f32 %v2118_v13, %v2601_v58  ;;  %v2679_v20 = vpop.eup %2119 }
 0x220   : > { %2121 = vrcp.f32 %v887_v14  ;;  %v825_v32 = vpop.xlane.xlu1 %824 }
 0x221   : > { %965 = vmatmul.f32.gmra.mxu1 %v931_v17  ;;  %v1012_v19 = vsub.f32 1.0, %v931_v17  ;;  %v845_v12 = vsub.f32 %v2607_v4, %v825_v32 }
 0x223   : > { %v1028_v15 = vmax.f32 %v1012_v19, 1e-07  ;;  %v872_v63 = vmul.f32 1.442695, %v845_v12 }
 0x225   : > { %v2682_v22 = vmul.f32 %v2601_v58, %v1028_v15 }
 0x226   : > { %v2122_v24 = vpop.eup %2121 }
 0x227   : > { %898 = vadd.xlane.f32.xlu0 %v2679_v20  ;;  %v889_v52 = vpop.xlane.xlu2 %888  ;;  %1061 = vadd.xlane.f32.xlu2 %v2682_v22  ;;  %v932_v26 = vmul.f32 %v2122_v24, %v2605_v2 }
 0x228   : > { %2123 = vrcp.f32 %v889_v52 }
 0x229   : > { %968 = vmatmul.f32.gmra.mxu1 %v932_v26  ;;  %v1013_v29 = vsub.f32 1.0, %v932_v26 }
 0x22b   : > { %v1029_v30 = vmax.f32 %v1013_v29, 1e-07 }
 0x22d   : > { %v2691_v58 = vmul.f32 %v2605_v2, %v1029_v30 }
 0x22e   : > { %v2124_v34 = vpop.eup %2123 }
 0x22f   : > { %v891_v35 = vpop.xlane.xlu2 %890  ;;  %832 = vmax.xlane.f32.xlu2 %v2688_v33  ;;  %1063 = vadd.xlane.f32.xlu0 %v2691_v58  ;;  %v933_v36 = vmul.f32 %v2124_v34, %v2612_v9 }
 0x230   : > { %2125 = vrcp.f32 %v891_v35 }
 0x231   : > { %971 = vmatmul.f32.gmra.mxu1 %v933_v36  ;;  %v1014_v37 = vsub.f32 1.0, %v933_v36 }
 0x233   : > { %v823_v38 = vpop.xlane.xlu0 %822  ;;  %v1030_v40 = vmax.f32 %v1014_v37, 1e-07 }
 0x234   : > { %v844_v11 = vsub.f32 %v2620_v16, %v823_v38 }
 0x235   : > { %v2699_v1 = vmul.f32 %v2612_v9, %v1030_v40 }
 0x236   : > { %v870_v2 = vmul.f32 1.442695, %v844_v11  ;;  %v2126_v39 = vpop.eup %2125 }
 0x237   : > { %v827_v8 = vpop.xlane.xlu2 %826  ;;  %1065 = vadd.xlane.f32.xlu2 %v2699_v1  ;;  %v934_v10 = vmul.f32 %v2126_v39, %v2616_v18 }
 0x238   : > { %2127 = vpow2.f32 %v870_v2  ;;  %v846_v4 = vsub.f32 %v2624_v23, %v827_v8 }
 0x239   : > { %2129 = vpow2.f32 %v872_v63  ;;  %974 = vmatmul.f32.gmra.mxu1 %v934_v10  ;;  %v1015_v42 = vsub.f32 1.0, %v934_v10 }
 0x23a   : > { %v874_v16 = vmul.f32 1.442695, %v846_v4 }
 0x23b   : > { %v893_v44 = vpop.xlane.xlu0 %892  ;;  %v1031_v46 = vmax.f32 %v1015_v42, 1e-07 }
 0x23c   : > { %2131 = vrcp.f32 %v893_v44 }
 0x23d   : > { %v2707_v9 = vmul.f32 %v2616_v18, %v1031_v46  ;;  %2133 = vpow2.f32 %v874_v16 }
 0x23e   : > { %v2704_v47 = vpop.eup %2127 }
 0x23f   : > { %v2709_v41 = vpop.eup %2129  ;;  %902 = vadd.xlane.f32.xlu0 %v2704_v47  ;;  %1067 = vadd.xlane.f32.xlu1 %v2707_v9  ;;  %v829_v23 = vpop.xlane.xlu2 %828 }
 0x240   : > { %904 = vadd.xlane.f32.xlu2 %v2709_v41  ;;  %v847_v50 = vsub.f32 %v2631_v28, %v829_v23 }
 0x242   : > { %v2132_v48 = vpop.eup %2131  ;;  %v876_v56 = vmul.f32 1.442695, %v847_v50 }
 0x243   : > { %v935_v49 = vmul.f32 %v2132_v48, %v2627_v25  ;;  %v2716_v55 = vpop.eup %2133 }
 0x244   : > { %2135 = vpow2.f32 %v876_v56 }
 0x245   : > { %977 = vmatmul.f32.gmra.mxu1 %v935_v49  ;;  %v1016_v53 = vsub.f32 1.0, %v935_v49 }
 0x247   : > { %v1032_v18 = vmax.f32 %v1016_v53, 1e-07  ;;  %906 = vadd.xlane.f32.xlu1 %v2716_v55 }
 0x249   : > { %v2720_v57 = vmul.f32 %v2627_v25, %v1032_v18 }
 0x24a   : > { %v2723_v60 = vpop.eup %2135 }
 0x24b   : > { %1069 = vadd.xlane.f32.xlu0 %v2720_v57 }
 0x253   : > { %908 = vadd.xlane.f32.xlu0 %v2723_v60 }
 0x265   : > { %v895_v61 = vpop.xlane.xlu0 %894 }
 0x266   : > { %2137 = vrcp.f32 %v895_v61 }
 0x26c   : > { %v2138_v28 = vpop.eup %2137 }
 0x26d   : > { %v897_v62 = vpop.xlane.xlu2 %896  ;;  %v831_v0 = vpop.xlane.xlu0 %830  ;;  %v936_v3 = vmul.f32 %v2138_v28, %v2655_v43 }
 0x26e   : > { %2139 = vrcp.f32 %v897_v62  ;;  %v848_v5 = vsub.f32 %v2661_v51, %v831_v0 }
 0x26f   : > { %980 = vmatmul.f32.gmra.mxu1 %v936_v3  ;;  %v1017_v25 = vsub.f32 1.0, %v936_v3 }
 0x270   : > { %v878_v6 = vmul.f32 1.442695, %v848_v5 }
 0x271   : > { %v1033_v7 = vmax.f32 %v1017_v25, 1e-07 }
 0x272   : > { %2141 = vpow2.f32 %v878_v6 }
 0x273   : > { %v2729_v13 = vmul.f32 %v2655_v43, %v1033_v7 }
 0x274   : > { %v2140_v14 = vpop.eup %2139 }
 0x275   : > { %1071 = vadd.xlane.f32.xlu2 %v2729_v13  ;;  %v937_v17 = vmul.f32 %v2140_v14, %v2664_v54 }
 0x277   : > { %983 = vmatmul.f32.gmra.mxu1 %v937_v17  ;;  %v1018_v19 = vsub.f32 1.0, %v937_v17 }
 0x278   : > { %v2733_v15 = vpop.eup %2141 }
 0x279   : > { %v1034_v21 = vmax.f32 %v1018_v19, 1e-07  ;;  %910 = vadd.xlane.f32.xlu0 %v2733_v15 }
 0x27b   : > { %v2737_v51 = vmul.f32 %v2664_v54, %v1034_v21 }
 0x27d   : > { %1073 = vadd.xlane.f32.xlu2 %v2737_v51  ;;  %v901_v43 = vpop.xlane.xlu1 %900 }
 0x292   : > { %v1060_v24 = vpop.xlane.xlu0 %1059 }
 0x293   : > { %2143 = vrcp.f32 %v1060_v24 }
 0x294   : > { %2145 = vrcp.f32 %v901_v43 }
 0x299   : > { %v2144_v52 = vpop.eup %2143 }
 0x29a   : > { %v899_v26 = vpop.xlane.xlu0 %898  ;;  %v1107_v27 = vmul.f32 %v2144_v52, %v2675_v45  ;;  %v1062_v29 = vpop.xlane.xlu2 %1061 }
 0x29b   : > { %2147 = vrcp.f32 %v899_v26  ;;  %v2146_v32 = vpop.eup %2145 }
 0x29c   : > { %2149 = vrcp.f32 %v1062_v29  ;;  %1139 = vmatmul.f32.vlgmr.msrb.gmra.mxu2 %v1107_v27  ;;  %v1188_v30 = vsub.f32 1.0, %v1107_v27  ;;  %v939_v63 = vmul.f32 %v2146_v32, %v2669_v59 }
 0x29e   : > { %v1204_v31 = vmax.f32 %v1188_v30, 1e-07  ;;  %v1020_v4 = vsub.f32 1.0, %v939_v63 }
 0x2a0   : > { %v2742_v54 = vmul.f32 %v1204_v31, %v2675_v45  ;;  %v1036_v16 = vmax.f32 %v1020_v4, 1e-07 }
 0x2a1   : > { %v2148_v34 = vpop.eup %2147 }
 0x2a2   : > { %v2150_v35 = vpop.eup %2149  ;;  %1236 = vadd.xlane.f32.xlu1 %v2742_v54  ;;  %v938_v36 = vmul.f32 %v2148_v34, %v2679_v20  ;;  %v833_v12 = vpop.xlane.xlu2 %832 }
 0x2a3   : > { %v1064_v37 = vpop.xlane.xlu0 %1063  ;;  %v1108_v38 = vmul.f32 %v2150_v35, %v2682_v22  ;;  %v849_v40 = vsub.f32 %v2688_v33, %v833_v12 }
 0x2a4   : > { %2151 = vrcp.f32 %v1064_v37  ;;  %986 = vmatmul.f32.gmra.mxu1 %v938_v36  ;;  %v1019_v11 = vsub.f32 1.0, %v938_v36 }
 0x2a5   : > { %1142 = vmatmul.f32.gmra.mxu2 %v1108_v38  ;;  %v1189_v45 = vsub.f32 1.0, %v1108_v38  ;;  %v880_v2 = vmul.f32 1.442695, %v849_v40 }
 0x2a6   : > { %v1035_v39 = vmax.f32 %v1019_v11, 1e-07 }
 0x2a7   : > { %v1205_v8 = vmax.f32 %v1189_v45, 1e-07  ;;  %2153 = vpow2.f32 %v880_v2 }
 0x2a8   : > { %v2750_v10 = vmul.f32 %v2679_v20, %v1035_v39 }
 0x2a9   : > { %v2753_v42 = vmul.f32 %v1205_v8, %v2682_v22  ;;  %v2762_v22 = vmul.f32 %v2669_v59, %v1036_v16 }
 0x2aa   : > { %v2152_v44 = vpop.eup %2151  ;;  %1075 = vadd.xlane.f32.xlu2 %v2750_v10  ;;  %v1066_v33 = vpop.xlane.xlu2 %1065 }
 0x2ab   : > { %1238 = vadd.xlane.f32.xlu1 %v2753_v42  ;;  %v1109_v46 = vmul.f32 %v2152_v44, %v2691_v58  ;;  %2155 = vrcp.f32 %v1066_v33 }
 0x2ac   : > { %989 = vmatmul.f32.gmra.mxu1 %v939_v63 }
 0x2ad   : > { %1145 = vmatmul.f32.gmra.mxu2 %v1109_v46  ;;  %v1190_v23 = vsub.f32 1.0, %v1109_v46  ;;  %v2758_v48 = vpop.eup %2153 }
 0x2ae   : > { %912 = vadd.xlane.f32.xlu0 %v2758_v48 }
 0x2af   : > { %v1206_v20 = vmax.f32 %v1190_v23, 1e-07 }
 0x2b1   : > { %v2765_v49 = vmul.f32 %v1206_v20, %v2691_v58  ;;  %v2156_v50 = vpop.eup %2155 }
 0x2b2   : > { %1077 = vadd.xlane.f32.xlu2 %v2762_v22  ;;  %v903_v53 = vpop.xlane.xlu0 %902  ;;  %v1068_v56 = vpop.xlane.xlu1 %1067  ;;  %v1110_v61 = vmul.f32 %v2156_v50, %v2699_v1 }
 0x2b3   : > { %v905_v18 = vpop.xlane.xlu2 %904  ;;  %1240 = vadd.xlane.f32.xlu1 %v2765_v49  ;;  %2157 = vrcp.f32 %v903_v53 }
 0x2b4   : > { %2159 = vrcp.f32 %v905_v18  ;;  %v1191_v28 = vsub.f32 1.0, %v1110_v61 }
 0x2b5   : > { %2161 = vrcp.f32 %v1068_v56  ;;  %1148 = vmatmul.f32.gmra.mxu2 %v1110_v61 }
 0x2b6   : > { %v1207_v59 = vmax.f32 %v1191_v28, 1e-07 }
 0x2b8   : > { %v2771_v58 = vmul.f32 %v1207_v59, %v2699_v1 }
 0x2b9   : > { %v2158_v62 = vpop.eup %2157 }
 0x2ba   : > { %v2160_v0 = vpop.eup %2159  ;;  %v940_v3 = vmul.f32 %v2158_v62, %v2704_v47  ;;  %v907_v6 = vpop.xlane.xlu1 %906  ;;  %1242 = vadd.xlane.f32.xlu0 %v2771_v58 }
 0x2bb   : > { %v2162_v5 = vpop.eup %2161  ;;  %v941_v25 = vmul.f32 %v2160_v0, %v2709_v41  ;;  %2163 = vrcp.f32 %v907_v6 }
 0x2bc   : > { %992 = vmatmul.f32.gmra.mxu1 %v940_v3  ;;  %v1021_v7 = vsub.f32 1.0, %v940_v3  ;;  %v1111_v14 = vmul.f32 %v2162_v5, %v2707_v9 }
 0x2bd   : > { %v1022_v17 = vsub.f32 1.0, %v941_v25 }
 0x2be   : > { %v1037_v19 = vmax.f32 %v1021_v7, 1e-07  ;;  %1151 = vmatmul.f32.gmra.mxu2 %v1111_v14  ;;  %v1192_v21 = vsub.f32 1.0, %v1111_v14  ;;  %v1070_v1 = vpop.xlane.xlu0 %1069 }
 0x2bf   : > { %2165 = vrcp.f32 %v1070_v1  ;;  %v1038_v24 = vmax.f32 %v1022_v17, 1e-07 }
 0x2c0   : > { %v1208_v43 = vmax.f32 %v1192_v21, 1e-07  ;;  %v2778_v52 = vmul.f32 %v2704_v47, %v1037_v19 }
 0x2c1   : > { %v2781_v26 = vmul.f32 %v2709_v41, %v1038_v24  ;;  %v2164_v27 = vpop.eup %2163 }
 0x2c2   : > { %v2784_v29 = vmul.f32 %v1208_v43, %v2707_v9  ;;  %1079 = vadd.xlane.f32.xlu1 %v2778_v52  ;;  %v942_v30 = vmul.f32 %v2164_v27, %v2716_v55 }
 0x2c3   : > { %1081 = vadd.xlane.f32.xlu0 %v2781_v26 }
 0x2c4   : > { %1244 = vadd.xlane.f32.xlu2 %v2784_v29  ;;  %995 = vmatmul.f32.gmra.mxu1 %v941_v25  ;;  %v1023_v32 = vsub.f32 1.0, %v942_v30 }
 0x2c5   : > { %v2166_v31 = vpop.eup %2165 }
 0x2c6   : > { %v909_v47 = vpop.xlane.xlu0 %908  ;;  %v1112_v34 = vmul.f32 %v2166_v31, %v2720_v57  ;;  %v1039_v41 = vmax.f32 %v1023_v32, 1e-07 }
 0x2c7   : > { %2167 = vrcp.f32 %v909_v47 }
 0x2c8   : > { %1154 = vmatmul.f32.gmra.mxu2 %v1112_v34  ;;  %v1193_v35 = vsub.f32 1.0, %v1112_v34  ;;  %v2792_v9 = vmul.f32 %v2716_v55, %v1039_v41 }
 0x2ca   : > { %v1209_v36 = vmax.f32 %v1193_v35, 1e-07 }
 0x2cc   : > { %1083 = vadd.xlane.f32.xlu2 %v2792_v9  ;;  %998 = vmatmul.f32.gmra.mxu1 %v942_v30  ;;  %v2796_v12 = vmul.f32 %v1209_v36, %v2720_v57 }
 0x2cd   : > { %v2168_v37 = vpop.eup %2167 }
 0x2ce   : > { %1246 = vadd.xlane.f32.xlu1 %v2796_v12  ;;  %v943_v38 = vmul.f32 %v2168_v37, %v2723_v60 }
 0x2d0   : > { %v1024_v40 = vsub.f32 1.0, %v943_v38 }
 0x2d2   : > { %v1040_v11 = vmax.f32 %v1024_v40, 1e-07 }
 0x2d4   : > { %1001 = vmatmul.f32.gmra.mxu1 %v943_v38  ;;  %v2801_v63 = vmul.f32 %v2723_v60, %v1040_v11 }
 0x2d6   : > { %1085 = vadd.xlane.f32.xlu1 %v2801_v63 }
 0x2e8   : > { %v1072_v55 = vpop.xlane.xlu2 %1071 }
 0x2e9   : > { %2169 = vrcp.f32 %v1072_v55 }
 0x2ec   : > { %v911_v45 = vpop.xlane.xlu0 %910 }
 0x2ed   : > { %2171 = vrcp.f32 %v911_v45 }
 0x2ef   : > { %v2170_v2 = vpop.eup %2169 }
 0x2f0   : > { %v1074_v57 = vpop.xlane.xlu2 %1073  ;;  %v1113_v39 = vmul.f32 %v2170_v2, %v2729_v13 }
 0x2f1   : > { %2173 = vrcp.f32 %v1074_v57 }
 0x2f2   : > { %1157 = vmatmul.f32.gmra.mxu2 %v1113_v39  ;;  %v1194_v8 = vsub.f32 1.0, %v1113_v39 }
 0x2f3   : > { %v2172_v4 = vpop.eup %2171 }
 0x2f4   : > { %v1210_v44 = vmax.f32 %v1194_v8, 1e-07  ;;  %v944_v33 = vmul.f32 %v2172_v4, %v2733_v15 }
 0x2f6   : > { %1004 = vmatmul.f32.gmra.mxu1 %v944_v33  ;;  %v1025_v60 = vsub.f32 1.0, %v944_v33  ;;  %v2807_v46 = vmul.f32 %v1210_v44, %v2729_v13 }
 0x2f7   : > { %v2174_v16 = vpop.eup %2173 }
 0x2f8   : > { %v1041_v23 = vmax.f32 %v1025_v60, 1e-07  ;;  %1248 = vadd.xlane.f32.xlu0 %v2807_v46  ;;  %v1114_v20 = vmul.f32 %v2174_v16, %v2737_v51 }
 0x2fa   : > { %1160 = vmatmul.f32.gmra.mxu2 %v1114_v20  ;;  %v1195_v50 = vsub.f32 1.0, %v1114_v20  ;;  %v2812_v53 = vmul.f32 %v2733_v15, %v1041_v23 }
 0x2fc   : > { %v1211_v18 = vmax.f32 %v1195_v50, 1e-07  ;;  %1087 = vadd.xlane.f32.xlu1 %v2812_v53 }
 0x2fe   : > { %v2816_v56 = vmul.f32 %v1211_v18, %v2737_v51 }
 0x300   : > { %1250 = vadd.xlane.f32.xlu0 %v2816_v56 }
 0x315   : > { %v1237_v13 = vpop.xlane.xlu1 %1236 }
 0x316   : > { %2175 = vrcp.f32 %v1237_v13 }
 0x31c   : > { %v2176_v61 = vpop.eup %2175 }
 0x31d   : > { %v1076_v28 = vpop.xlane.xlu2 %1075  ;;  %v1284_v59 = vmul.f32 %v2176_v61, %v2742_v54 }
 0x31e   : > { %v1239_v62 = vpop.xlane.xlu1 %1238  ;;  %2177 = vrcp.f32 %v1076_v28 }
 0x31f   : > { %2179 = vrcp.f32 %v1239_v62  ;;  %1316 = vmatmul.f32.vlgmr.msrb.gmra.mxu3 %v1284_v59  ;;  %v1365_v15 = vsub.f32 1.0, %v1284_v59 }
 0x321   : > { %v1381_v0 = vmax.f32 %v1365_v15, 1e-07  ;;  %v913_v3 = vpop.xlane.xlu0 %912 }
 0x322   : > { %2181 = vrcp.f32 %v913_v3 }
 0x323   : > { %v2821_v5 = vmul.f32 %v1381_v0, %v2742_v54 }
 0x324   : > { %v2178_v51 = vpop.eup %2177 }
 0x325   : > { %v2180_v25 = vpop.eup %2179  ;;  %1413 = vadd.xlane.f32.xlu2 %v2821_v5  ;;  %v1078_v6 = vpop.xlane.xlu2 %1077  ;;  %v1115_v7 = vmul.f32 %v2178_v51, %v2750_v10 }
 0x326   : > { %2183 = vrcp.f32 %v1078_v6  ;;  %v1241_v14 = vpop.xlane.xlu1 %1240  ;;  %v1285_v17 = vmul.f32 %v2180_v25, %v2753_v42 }
 0x327   : > { %2185 = vrcp.f32 %v1241_v14  ;;  %1163 = vmatmul.f32.gmra.mxu2 %v1115_v7  ;;  %v1196_v19 = vsub.f32 1.0, %v1115_v7 }
 0x328   : > { %1319 = vmatmul.f32.gmra.mxu3 %v1285_v17  ;;  %v1366_v21 = vsub.f32 1.0, %v1285_v17  ;;  %v2182_v1 = vpop.eup %2181 }
 0x329   : > { %v1212_v24 = vmax.f32 %v1196_v19, 1e-07  ;;  %v945_v54 = vmul.f32 %v2182_v1, %v2758_v48 }
 0x32a   : > { %v1382_v43 = vmax.f32 %v1366_v21, 1e-07 }
 0x32b   : > { %v2828_v27 = vmul.f32 %v1212_v24, %v2750_v10  ;;  %1007 = vmatmul.f32.gmra.mxu1 %v945_v54  ;;  %v1026_v31 = vsub.f32 1.0, %v945_v54 }
 0x32c   : > { %v2184_v30 = vpop.eup %2183  ;;  %v2831_v32 = vmul.f32 %v1382_v43, %v2753_v42 }
 0x32d   : > { %v2186_v47 = vpop.eup %2185  ;;  %1252 = vadd.xlane.f32.xlu0 %v2828_v27  ;;  %v1116_v34 = vmul.f32 %v2184_v30, %v2762_v22  ;;  %v1042_v41 = vmax.f32 %v1026_v31, 1e-07  ;;  %v1243_v35 = vpop.xlane.xlu0 %1242 }
 0x32e   : > { %1415 = vadd.xlane.f32.xlu2 %v2831_v32  ;;  %v1286_v36 = vmul.f32 %v2186_v47, %v2765_v49  ;;  %2187 = vrcp.f32 %v1243_v35 }
 0x32f   : > { %1166 = vmatmul.f32.gmra.mxu2 %v1116_v34  ;;  %v1197_v10 = vsub.f32 1.0, %v1116_v34  ;;  %v2838_v38 = vmul.f32 %v2758_v48, %v1042_v41 }
 0x330   : > { %1322 = vmatmul.f32.gmra.mxu3 %v1286_v36  ;;  %v1367_v37 = vsub.f32 1.0, %v1286_v36 }
 0x331   : > { %v1213_v42 = vmax.f32 %v1197_v10, 1e-07  ;;  %1089 = vadd.xlane.f32.xlu1 %v2838_v38 }
 0x332   : > { %v1383_v40 = vmax.f32 %v1367_v37, 1e-07 }
 0x333   : > { %v2842_v11 = vmul.f32 %v1213_v42, %v2762_v22 }
 0x334   : > { %v2845_v55 = vmul.f32 %v1383_v40, %v2765_v49  ;;  %v2188_v45 = vpop.eup %2187 }
 0x335   : > { %1254 = vadd.xlane.f32.xlu0 %v2842_v11  ;;  %v1080_v2 = vpop.xlane.xlu1 %1079  ;;  %v1287_v48 = vmul.f32 %v2188_v45, %v2771_v58 }
 0x336   : > { %1417 = vadd.xlane.f32.xlu2 %v2845_v55  ;;  %2189 = vrcp.f32 %v1080_v2  ;;  %v1082_v57 = vpop.xlane.xlu0 %1081 }
 0x337   : > { %v1245_v39 = vpop.xlane.xlu2 %1244  ;;  %2191 = vrcp.f32 %v1082_v57  ;;  %v1368_v8 = vsub.f32 1.0, %v1287_v48 }
 0x338   : > { %2193 = vrcp.f32 %v1245_v39  ;;  %1325 = vmatmul.f32.gmra.mxu3 %v1287_v48 }
 0x339   : > { %v1384_v22 = vmax.f32 %v1368_v8, 1e-07 }
 0x33b   : > { %v2851_v49 = vmul.f32 %v1384_v22, %v2771_v58 }
 0x33c   : > { %v2190_v4 = vpop.eup %2189 }
 0x33d   : > { %v2192_v44 = vpop.eup %2191  ;;  %v1117_v33 = vmul.f32 %v2190_v4, %v2778_v52  ;;  %1419 = vadd.xlane.f32.xlu1 %v2851_v49 }
 0x33e   : > { %v2194_v60 = vpop.eup %2193  ;;  %v1118_v16 = vmul.f32 %v2192_v44, %v2781_v26  ;;  %v2900_v44 = vpop.f32.mrf.mxu2 }
 0x33f   : > { %v1084_v23 = vpop.xlane.xlu2 %1083  ;;  %1169 = vmatmul.f32.gmra.mxu2 %v1117_v33  ;;  %v1198_v20 = vsub.f32 1.0, %v1117_v33  ;;  %v1288_v50 = vmul.f32 %v2194_v60, %v2784_v29 }
 0x340   : > { %2195 = vrcp.f32 %v1084_v23  ;;  %v1199_v18 = vsub.f32 1.0, %v1118_v16 }
 0x341   : > { %v1214_v13 = vmax.f32 %v1198_v20, 1e-07  ;;  %1328 = vmatmul.f32.gmra.mxu3 %v1288_v50  ;;  %v1369_v61 = vsub.f32 1.0, %v1288_v50  ;;  %v1247_v58 = vpop.xlane.xlu1 %1246 }
 0x342   : > { %v1215_v28 = vmax.f32 %v1199_v18, 1e-07  ;;  %2197 = vrcp.f32 %v1247_v58 }
 0x343   : > { %v1385_v59 = vmax.f32 %v1369_v61, 1e-07  ;;  %v2858_v62 = vmul.f32 %v1214_v13, %v2778_v52 }
 0x344   : > { %v2861_v15 = vmul.f32 %v1215_v28, %v2781_v26 }
 0x345   : > { %v2864_v0 = vmul.f32 %v1385_v59, %v2784_v29  ;;  %1256 = vadd.xlane.f32.xlu2 %v2858_v62 }
 0x346   : > { %v2196_v3 = vpop.eup %2195  ;;  %1258 = vadd.xlane.f32.xlu1 %v2861_v15  ;;  %v2905_v61 = vpop.f32.mrf.mxu2 }
 0x347   : > { %v1119_v51 = vmul.f32 %v2196_v3, %v2792_v9  ;;  %1421 = vadd.xlane.f32.xlu0 %v2864_v0  ;;  %1172 = vmatmul.f32.gmra.mxu2 %v1118_v16 }
 0x348   : > { %v2198_v25 = vpop.eup %2197 }
 0x349   : > { %v1200_v6 = vsub.f32 1.0, %v1119_v51  ;;  %v1086_v52 = vpop.xlane.xlu1 %1085  ;;  %v1289_v7 = vmul.f32 %v2198_v25, %v2796_v12 }
 0x34a   : > { %2199 = vrcp.f32 %v1086_v52 }
 0x34b   : > { %v1216_v26 = vmax.f32 %v1200_v6, 1e-07  ;;  %1331 = vmatmul.f32.gmra.mxu3 %v1289_v7  ;;  %v1370_v29 = vsub.f32 1.0, %v1289_v7 }
 0x34d   : > { %v2872_v14 = vmul.f32 %v1216_v26, %v2792_v9  ;;  %v1386_v17 = vmax.f32 %v1370_v29, 1e-07 }
 0x34f   : > { %1260 = vadd.xlane.f32.xlu0 %v2872_v14  ;;  %1175 = vmatmul.f32.gmra.mxu2 %v1119_v51  ;;  %v2876_v19 = vmul.f32 %v1386_v17, %v2796_v12  ;;  %v2920_v17 = vpop.f32.mrf.mxu2 }
 0x350   : > { %v2200_v21 = vpop.eup %2199 }
 0x351   : > { %1423 = vadd.xlane.f32.xlu2 %v2876_v19  ;;  %v1120_v1 = vmul.f32 %v2200_v21, %v2801_v63 }
 0x353   : > { %v1201_v24 = vsub.f32 1.0, %v1120_v1 }
 0x355   : > { %v1217_v54 = vmax.f32 %v1201_v24, 1e-07 }
 0x357   : > { %1178 = vmatmul.f32.gmra.mxu2 %v1120_v1  ;;  %v2881_v43 = vmul.f32 %v1217_v54, %v2801_v63 }
 0x359   : > { %1262 = vadd.xlane.f32.xlu2 %v2881_v43 }
 0x36b   : > { %v1249_v9 = vpop.xlane.xlu0 %1248 }
 0x36c   : > { %2201 = vrcp.f32 %v1249_v9 }
 0x36f   : > { %v1088_v30 = vpop.xlane.xlu1 %1087 }
 0x370   : > { %2203 = vrcp.f32 %v1088_v30 }
 0x372   : > { %v2202_v31 = vpop.eup %2201 }
 0x373   : > { %v1251_v12 = vpop.xlane.xlu0 %1250  ;;  %v1290_v47 = vmul.f32 %v2202_v31, %v2807_v46  ;;  %v1149_v31 = vpop.f32.mrf.mxu2 }
 0x374   : > { %2205 = vrcp.f32 %v1251_v12 }
 0x375   : > { %1334 = vmatmul.f32.gmra.mxu3 %v1290_v47  ;;  %v1371_v34 = vsub.f32 1.0, %v1290_v47 }
 0x376   : > { %v2204_v41 = vpop.eup %2203 }
 0x377   : > { %v1121_v35 = vmul.f32 %v2204_v41, %v2812_v53  ;;  %v1387_v36 = vmax.f32 %v1371_v34, 1e-07 }
 0x379   : > { %1181 = vmatmul.f32.gmra.mxu2 %v1121_v35  ;;  %v1202_v63 = vsub.f32 1.0, %v1121_v35  ;;  %v2887_v10 = vmul.f32 %v1387_v36, %v2807_v46 }
 0x37a   : > { %v2206_v37 = vpop.eup %2205 }
 0x37b   : > { %1425 = vadd.xlane.f32.xlu1 %v2887_v10  ;;  %v1291_v42 = vmul.f32 %v2206_v37, %v2816_v56  ;;  %v1218_v40 = vmax.f32 %v1202_v63, 1e-07 }
 0x37d   : > { %1337 = vmatmul.f32.gmra.mxu3 %v1291_v42  ;;  %v1372_v45 = vsub.f32 1.0, %v1291_v42  ;;  %v2892_v57 = vmul.f32 %v1218_v40, %v2812_v53 }
 0x37f   : > { %v1388_v2 = vmax.f32 %v1372_v45, 1e-07  ;;  %v1152_v45 = vpop.f32.mrf.mxu2 }
 0x381   : > { %v2895_v48 = vmul.f32 %v1388_v2, %v2816_v56 }
 0x383   : > { %1264 = vadd.xlane.f32.xlu1 %v2892_v57  ;;  %1427 = vadd.xlane.f32.xlu0 %v2895_v48 }
 0x398   : > { %v1414_v46 = vpop.xlane.xlu2 %1413 }
 0x399   : > { %2207 = vrcp.f32 %v1414_v46 }
 0x39f   : > { %v2208_v39 = vpop.eup %2207 }
 0x3a0   : > { %v1253_v8 = vpop.xlane.xlu0 %1252  ;;  %v1461_v22 = vmul.f32 %v2208_v39, %v2821_v5 }
 0x3a1   : > { %v1416_v4 = vpop.xlane.xlu2 %1415  ;;  %2209 = vrcp.f32 %v1253_v8 }
 0x3a2   : > { %2211 = vrcp.f32 %v1416_v4  ;;  %1493 = vmatmul.f32.vlgmr.msrb.gmra.mxu0 %v1461_v22  ;;  %v2941_v22 = vpop.f32.mrf.mxu2 }
 0x3a4   : > { %v1090_v53 = vpop.xlane.xlu1 %1089 }
 0x3a5   : > { %2213 = vrcp.f32 %v1090_v53 }
 0x3a7   : > { %v2210_v56 = vpop.eup %2209 }
 0x3a8   : > { %v2212_v33 = vpop.eup %2211  ;;  %v1255_v60 = vpop.xlane.xlu0 %1254  ;;  %v1292_v16 = vmul.f32 %v2210_v56, %v2828_v27 }
 0x3a9   : > { %v1418_v23 = vpop.xlane.xlu2 %1417  ;;  %2215 = vrcp.f32 %v1255_v60  ;;  %v1462_v20 = vmul.f32 %v2212_v33, %v2831_v32 }
 0x3aa   : > { %2217 = vrcp.f32 %v1418_v23  ;;  %1340 = vmatmul.f32.gmra.mxu3 %v1292_v16  ;;  %v1373_v5 = vsub.f32 1.0, %v1292_v16 }
 0x3ab   : > { %1496 = vmatmul.f32.gmra.mxu0 %v1462_v20  ;;  %v2214_v50 = vpop.eup %2213 }
 0x3ac   : > { %v1389_v18 = vmax.f32 %v1373_v5, 1e-07  ;;  %v1122_v13 = vmul.f32 %v2214_v50, %v2838_v38 }
 0x3ae   : > { %v2908_v58 = vmul.f32 %v1389_v18, %v2828_v27  ;;  %1184 = vmatmul.f32.gmra.mxu2 %v1122_v13  ;;  %v1203_v59 = vsub.f32 1.0, %v1122_v13 }
 0x3af   : > { %v2216_v28 = vpop.eup %2215 }
 0x3b0   : > { %v2218_v3 = vpop.eup %2217  ;;  %1429 = vadd.xlane.f32.xlu2 %v2908_v58  ;;  %v1293_v32 = vmul.f32 %v2216_v28, %v2842_v11  ;;  %v1219_v51 = vmax.f32 %v1203_v59, 1e-07  ;;  %v1420_v25 = vpop.xlane.xlu1 %1419 }
 0x3b1   : > { %v1463_v6 = vmul.f32 %v2218_v3, %v2845_v55  ;;  %2219 = vrcp.f32 %v1420_v25 }
 0x3b2   : > { %1343 = vmatmul.f32.gmra.mxu3 %v1293_v32  ;;  %v1374_v52 = vsub.f32 1.0, %v1293_v32  ;;  %v2914_v7 = vmul.f32 %v1219_v51, %v2838_v38 }
 0x3b3   : > { %1499 = vmatmul.f32.gmra.mxu0 %v1463_v6 }
 0x3b4   : > { %v1390_v27 = vmax.f32 %v1374_v52, 1e-07  ;;  %1266 = vadd.xlane.f32.xlu0 %v2914_v7 }
 0x3b6   : > { %v2918_v26 = vmul.f32 %v1390_v27, %v2842_v11 }
 0x3b7   : > { %v2220_v29 = vpop.eup %2219 }
 0x3b8   : > { %v1257_v21 = vpop.xlane.xlu2 %1256  ;;  %1431 = vadd.xlane.f32.xlu1 %v2918_v26  ;;  %v1464_v1 = vmul.f32 %v2220_v29, %v2851_v49 }
 0x3b9   : > { %2221 = vrcp.f32 %v1257_v21  ;;  %v1259_v55 = vpop.xlane.xlu1 %1258 }
 0x3ba   : > { %2223 = vrcp.f32 %v1259_v55  ;;  %v1422_v24 = vpop.xlane.xlu0 %1421 }
 0x3bb   : > { %2225 = vrcp.f32 %v1422_v24  ;;  %1502 = vmatmul.f32.gmra.mxu0 %v1464_v1 }
 0x3bf   : > { %v2222_v38 = vpop.eup %2221 }
 0x3c0   : > { %v2224_v54 = vpop.eup %2223  ;;  %v1294_v9 = vmul.f32 %v2222_v38, %v2858_v62 }
 0x3c1   : > { %v2226_v11 = vpop.eup %2225  ;;  %v1295_v30 = vmul.f32 %v2224_v54, %v2861_v15 }
 0x3c2   : > { %v1261_v12 = vpop.xlane.xlu0 %1260  ;;  %1346 = vmatmul.f32.gmra.mxu3 %v1294_v9  ;;  %v1375_v47 = vsub.f32 1.0, %v1294_v9  ;;  %v1465_v34 = vmul.f32 %v2226_v11, %v2864_v0 }
 0x3c3   : > { %2227 = vrcp.f32 %v1261_v12  ;;  %v1376_v41 = vsub.f32 1.0, %v1295_v30 }
 0x3c4   : > { %1505 = vmatmul.f32.gmra.mxu0 %v1465_v34  ;;  %v1391_v49 = vmax.f32 %v1375_v47, 1e-07  ;;  %v1424_v35 = vpop.xlane.xlu2 %1423 }
 0x3c5   : > { %v1392_v36 = vmax.f32 %v1376_v41, 1e-07  ;;  %2229 = vrcp.f32 %v1424_v35 }
 0x3c6   : > { %v2928_v63 = vmul.f32 %v1391_v49, %v2858_v62 }
 0x3c7   : > { %v2931_v37 = vmul.f32 %v1392_v36, %v2861_v15 }
 0x3c8   : > { %1433 = vadd.xlane.f32.xlu2 %v2928_v63 }
 0x3c9   : > { %v2228_v42 = vpop.eup %2227  ;;  %1435 = vadd.xlane.f32.xlu0 %v2931_v37 }
 0x3ca   : > { %1349 = vmatmul.f32.gmra.mxu3 %v1295_v30  ;;  %v1296_v0 = vmul.f32 %v2228_v42, %v2872_v14 }
 0x3cb   : > { %v2230_v40 = vpop.eup %2229 }
 0x3cc   : > { %v1377_v2 = vsub.f32 1.0, %v1296_v0  ;;  %v1263_v46 = vpop.xlane.xlu2 %1262  ;;  %v1466_v39 = vmul.f32 %v2230_v40, %v2876_v19  ;;  %v1158_v19 = vpop.f32.mrf.mxu2 }
 0x3cd   : > { %2231 = vrcp.f32 %v1263_v46 }
 0x3ce   : > { %v1393_v62 = vmax.f32 %v1377_v2, 1e-07  ;;  %1508 = vmatmul.f32.gmra.mxu0 %v1466_v39 }
 0x3d0   : > { %v2938_v15 = vmul.f32 %v1393_v62, %v2872_v14  ;;  %v2948_v14 = vpop.f32.mrf.mxu3 }
 0x3d2   : > { %1437 = vadd.xlane.f32.xlu1 %v2938_v15  ;;  %1352 = vmatmul.f32.gmra.mxu3 %v1296_v0 }
 0x3d3   : > { %v2232_v8 = vpop.eup %2231 }
 0x3d4   : > { %v1297_v4 = vmul.f32 %v2232_v8, %v2881_v43  ;;  %v1161_v60 = vpop.f32.mrf.mxu2 }
 0x3d6   : > { %v1378_v53 = vsub.f32 1.0, %v1297_v4 }
 0x3d8   : > { %v1394_v56 = vmax.f32 %v1378_v53, 1e-07  ;;  %v2952_v5 = vpop.f32.mrf.mxu3 }
 0x3da   : > { %1355 = vmatmul.f32.gmra.mxu3 %v1297_v4  ;;  %v2945_v33 = vmul.f32 %v1394_v56, %v2881_v43 }
 0x3dc   : > { %1439 = vadd.xlane.f32.xlu2 %v2945_v33  ;;  %v2950_v16 = vpop.f32.mrf.mxu2 }
 0x3e0   : > { %v1323_v51 = vpop.f32.mrf.mxu3 }
 0x3e4   : > { %v1167_v13 = vpop.f32.mrf.mxu2 }
 0x3e8   : > { %v1326_v52 = vpop.f32.mrf.mxu3 }
 0x3ec   : > { %v1170_v25 = vpop.f32.mrf.mxu2 }
 0x3ee   : > { %v1426_v23 = vpop.xlane.xlu1 %1425 }
 0x3ef   : > { %2233 = vrcp.f32 %v1426_v23 }
 0x3f0   : > { %v2968_v29 = vpop.f32.mrf.mxu3 }
 0x3f4   : > { %1558 = vrot.lane.b32.xlu2 %v2900_v44, %s2338_s8  ;;  %v2965_v27 = vpop.f32.mrf.mxu2 }
 0x3f5   : > { %v2234_v20 = vpop.eup %2233 }
 0x3f6   : > { %v1265_v50 = vpop.xlane.xlu1 %1264  ;;  %v1428_v43 = vpop.xlane.xlu0 %1427  ;;  %v1467_v18 = vmul.f32 %v2234_v20, %v2887_v10 }
 0x3f7   : > { %2235 = vrcp.f32 %v1265_v50 }
 0x3f8   : > { %2237 = vrcp.f32 %v1428_v43  ;;  %1511 = vmatmul.f32.gmra.mxu0 %v1467_v18  ;;  %v1332_v21 = vpop.f32.mrf.mxu3 }
 0x3fc   : > { %1564 = vrot.lane.b32.xlu2 %v1149_v31, %s2338_s8 }
 0x3fd   : > { %v2236_v28 = vpop.eup %2235 }
 0x3fe   : > { %v2238_v59 = vpop.eup %2237  ;;  %v1298_v3 = vmul.f32 %v2236_v28, %v2892_v57 }
 0x3ff   : > { %v1468_v32 = vmul.f32 %v2238_v59, %v2895_v48  ;;  %v1176_v48 = vpop.f32.mrf.mxu2 }
 0x400   : > { %1358 = vmatmul.f32.gmra.mxu3 %v1298_v3  ;;  %v1379_v44 = vsub.f32 1.0, %v1298_v3  ;;  %v1335_v1 = vpop.f32.mrf.mxu3 }
 0x401   : > { %1514 = vmatmul.f32.gmra.mxu0 %v1468_v32 }
 0x402   : > { %v1395_v6 = vmax.f32 %v1379_v44, 1e-07 }
 0x404   : > { %v2961_v10 = vmul.f32 %v1395_v6, %v2892_v57  ;;  %1570 = vrot.lane.b32.xlu2 %v1158_v19, %s2338_s8 }
 0x406   : > { %1441 = vadd.xlane.f32.xlu0 %v2961_v10 }
 0x407   : > { %v1179_v57 = vpop.f32.mrf.mxu2 }
 0x40c   : > { %1576 = vrot.lane.b32.xlu2 %v1167_v13, %s2338_s8 }
 0x40f   : > { %v2974_v54 = vpop.f32.mrf.mxu2 }
 0x414   : > { %1582 = vrot.lane.b32.xlu2 %v1176_v48, %s2338_s8 }
 0x41a   : > { %1560 = vrot.lane.b32.xlu0 %v2905_v61, %s2338_s8  ;;  %v2978_v61 = vpop.f32.mrf.mxu3 }
 0x41f   : > { %v1494_v53 = vpop.f32.mrf.mxu0 }
 0x422   : > { %1566 = vrot.lane.b32.xlu0 %v1152_v45, %s2338_s8 }
 0x423   : > { %v1430_v55 = vpop.xlane.xlu2 %1429 }
 0x424   : > { %2239 = vrcp.f32 %v1430_v55 }
 0x427   : > { %v1267_v24 = vpop.xlane.xlu0 %1266 }
 0x428   : > { %2241 = vrcp.f32 %v1267_v24 }
 0x42a   : > { %v2240_v38 = vpop.eup %2239  ;;  %1572 = vrot.lane.b32.xlu0 %v1161_v60, %s2338_s8 }
 0x42b   : > { %v1432_v9 = vpop.xlane.xlu1 %1431  ;;  %v1469_v11 = vmul.f32 %v2240_v38, %v2908_v58 }
 0x42c   : > { %2243 = vrcp.f32 %v1432_v9 }
 0x42d   : > { %1517 = vmatmul.f32.gmra.mxu0 %v1469_v11  ;;  %v1341_v58 = vpop.f32.mrf.mxu3 }
 0x42e   : > { %v2242_v30 = vpop.eup %2241 }
 0x42f   : > { %v1299_v31 = vmul.f32 %v2242_v30, %v2914_v7 }
 0x431   : > { %v1185_v47 = vpop.f32.mrf.mxu2  ;;  %1361 = vmatmul.f32.gmra.mxu3 %v1299_v31  ;;  %v1380_v34 = vsub.f32 1.0, %v1299_v31 }
 0x432   : > { %v2244_v12 = vpop.eup %2243  ;;  %1578 = vrot.lane.b32.xlu0 %v1170_v25, %s2338_s8  ;;  %1588 = vrot.lane.b32.xlu2 %v1185_v47, %s2338_s8 }
 0x433   : > { %v1470_v41 = vmul.f32 %v2244_v12, %v2918_v26  ;;  %v1396_v49 = vmax.f32 %v1380_v34, 1e-07 }
 0x435   : > { %1520 = vmatmul.f32.gmra.mxu0 %v1470_v41  ;;  %v2985_v35 = vmul.f32 %v1396_v49, %v2914_v7  ;;  %v1344_v0 = vpop.f32.mrf.mxu3 }
 0x437   : > { %1443 = vadd.xlane.f32.xlu1 %v2985_v35 }
 0x43a   : > { %1584 = vrot.lane.b32.xlu0 %v1179_v57, %s2338_s8  ;;  %1626 = vrot.lane.b32.xlu2 %v1323_v51, %s2339_s13 }
 0x43b   : > { %v1434_v36 = vpop.xlane.xlu2 %1433 }
 0x43c   : > { %2245 = vrcp.f32 %v1434_v36  ;;  %v1436_v42 = vpop.xlane.xlu0 %1435 }
 0x43d   : > { %2247 = vrcp.f32 %v1436_v42 }
 0x442   : > { %v2246_v40 = vpop.eup %2245  ;;  %1622 = vrot.lane.b32.xlu0 %v2948_v14, %s2339_s13  ;;  %1632 = vrot.lane.b32.xlu2 %v1332_v21, %s2339_s13 }
 0x443   : > { %v1471_v7 = vmul.f32 %v2246_v40, %v2928_v63  ;;  %v2248_v45 = vpop.eup %2247 }
 0x444   : > { %v1472_v46 = vmul.f32 %v2248_v45, %v2931_v37 }
 0x445   : > { %1523 = vmatmul.f32.gmra.mxu0 %v1471_v7  ;;  %v1438_v26 = vpop.xlane.xlu1 %1437  ;;  %v1347_v2 = vpop.f32.mrf.mxu3 }
 0x446   : > { %2249 = vrcp.f32 %v1438_v26 }
 0x44a   : > { %1628 = vrot.lane.b32.xlu0 %v1326_v52, %s2339_s13  ;;  %1638 = vrot.lane.b32.xlu2 %v1341_v58, %s2339_s13 }
 0x44c   : > { %v2250_v39 = vpop.eup %2249 }
 0x44d   : > { %1526 = vmatmul.f32.gmra.mxu0 %v1472_v46  ;;  %v1350_v8 = vpop.f32.mrf.mxu3  ;;  %v1473_v63 = vmul.f32 %v2250_v39, %v2938_v15  ;;  %v1497_v15 = vpop.f32.mrf.mxu0 }
 0x44f   : > { %v1440_v62 = vpop.xlane.xlu2 %1439 }
 0x450   : > { %1562 = vrot.lane.b32.xlu1 %v2920_v17, %s2338_s8  ;;  %2251 = vrcp.f32 %v1440_v62  ;;  %v3006_v17 = vpop.f32.mrf.mxu1 }
 0x452   : > { %1634 = vrot.lane.b32.xlu0 %v1335_v1, %s2339_s13  ;;  %1644 = vrot.lane.b32.xlu2 %v1350_v8, %s2339_s13 }
 0x455   : > { %1529 = vmatmul.f32.gmra.mxu0 %v1473_v63  ;;  %v1353_v56 = vpop.f32.mrf.mxu3 }
 0x456   : > { %v2252_v4 = vpop.eup %2251 }
 0x457   : > { %v1474_v37 = vmul.f32 %v2252_v4, %v2945_v33  ;;  %v3019_v23 = vpop.permute.xlu2 %1558 }
 0x458   : > { %1568 = vrot.lane.b32.xlu1 %v2941_v22, %s2338_s8  ;;  %v3013_v19 = vpop.f32.mrf.mxu1  ;;  %v1500_v22 = vpop.f32.mrf.mxu0 }
 0x45a   : > { %1640 = vrot.lane.b32.xlu0 %v1344_v0, %s2339_s13 }
 0x45d   : > { %1532 = vmatmul.f32.gmra.mxu0 %v1474_v37 }
 0x45f   : > { %v3027_v28 = vpop.permute.xlu2 %1564 }
 0x460   : > { %1574 = vrot.lane.b32.xlu1 %v2950_v16, %s2338_s8  ;;  %v969_v33 = vpop.f32.mrf.mxu1  ;;  %v1503_v60 = vpop.f32.mrf.mxu0 }
 0x461   : > { %v1356_v16 = vpop.f32.mrf.mxu3 }
 0x462   : > { %1646 = vrot.lane.b32.xlu0 %v1353_v56, %s2339_s13 }
 0x467   : > { %v3035_v51 = vpop.permute.xlu2 %1570 }
 0x468   : > { %1580 = vrot.lane.b32.xlu1 %v2965_v27, %s2338_s8  ;;  %v3021_v20 = vpop.f32.mrf.mxu1  ;;  %v1506_v43 = vpop.f32.mrf.mxu0 }
 0x46f   : > { %v3041_v6 = vpop.permute.xlu2 %1576 }
 0x470   : > { %1586 = vrot.lane.b32.xlu1 %v2974_v54, %s2338_s8  ;;  %v1509_v59 = vpop.f32.mrf.mxu0 }
 0x477   : > { %v3047_v52 = vpop.permute.xlu2 %1582 }
 0x478   : > { %1624 = vrot.lane.b32.xlu1 %v2952_v5, %s2339_s13  ;;  %v3029_v5 = vpop.f32.mrf.mxu1  ;;  %v1512_v32 = vpop.f32.mrf.mxu0 }
 0x479   : > { %v1442_v14 = vpop.xlane.xlu0 %1441 }
 0x47a   : > { %2253 = vrcp.f32 %v1442_v14 }
 0x480   : > { %v2254_v50 = vpop.eup %2253  ;;  %1630 = vrot.lane.b32.xlu1 %v2968_v29, %s2339_s13  ;;  %v978_v3 = vpop.f32.mrf.mxu1 }
 0x481   : > { %v1475_v18 = vmul.f32 %v2254_v50, %v2961_v10  ;;  %v1515_v44 = vpop.f32.mrf.mxu0 }
 0x483   : > { %v1359_v13 = vpop.f32.mrf.mxu3  ;;  %1535 = vmatmul.f32.gmra.mxu0 %v1475_v18 }
 0x484   : > { %1650 = vrot.lane.b32.xlu2 %v1359_v13, %s2339_s13 }
 0x488   : > { %1636 = vrot.lane.b32.xlu1 %v2978_v61, %s2339_s13  ;;  %v3038_v25 = vpop.f32.mrf.mxu1 }
 0x48c   : > { %1688 = vrot.lane.b32.xlu2 %v1497_v15, %s2340_s14  ;;  %v3050_v48 = vpop.permute.xlu2 %1588  ;;  %v1561_v47 = vpop.permute.xlu0 %1560 }
 0x48d   : > { %v1735_v14 = vsel %vm573_vm0, %v3013_v19, %v1561_v47 }
 0x490   : > { %1642 = vrot.lane.b32.xlu1 %v1347_v2, %s2339_s13  ;;  %v3045_v10 = vpop.f32.mrf.mxu1 }
 0x494   : > { %1694 = vrot.lane.b32.xlu2 %v1506_v43, %s2340_s14  ;;  %v1627_v38 = vpop.permute.xlu2 %1626  ;;  %v1567_v42 = vpop.permute.xlu0 %1566 }
 0x498   : > { %1648 = vrot.lane.b32.xlu1 %v1356_v16, %s2339_s13  ;;  %v987_v27 = vpop.f32.mrf.mxu1 }
 0x49c   : > { %1700 = vrot.lane.b32.xlu2 %v1515_v44, %s2340_s14  ;;  %v1633_v11 = vpop.permute.xlu2 %1632  ;;  %v1573_v46 = vpop.permute.xlu0 %1572 }
 0x4a0   : > { %1686 = vrot.lane.b32.xlu1 %v1494_v53, %s2340_s14  ;;  %v3054_v1 = vpop.f32.mrf.mxu1 }
 0x4a4   : > { %v1639_v58 = vpop.permute.xlu2 %1638  ;;  %v1579_v15 = vpop.permute.xlu0 %1578 }
 0x4a8   : > { %1692 = vrot.lane.b32.xlu1 %v1503_v60, %s2340_s14  ;;  %v3058_v9 = vpop.f32.mrf.mxu1 }
 0x4aa   : > { %v1444_v29 = vpop.xlane.xlu1 %1443  ;;  %v1518_v21 = vpop.f32.mrf.mxu0 }
 0x4ab   : > { %2255 = vrcp.f32 %v1444_v29 }
 0x4ac   : > { %v1645_v2 = vpop.permute.xlu2 %1644  ;;  %v1585_v18 = vpop.permute.xlu0 %1584 }
 0x4b0   : > { %1698 = vrot.lane.b32.xlu1 %v1512_v32, %s2340_s14  ;;  %v996_v34 = vpop.f32.mrf.mxu1 }
 0x4b1   : > { %v2256_v57 = vpop.eup %2255 }
 0x4b2   : > { %v1476_v55 = vmul.f32 %v2256_v57, %v2985_v35  ;;  %v1521_v54 = vpop.f32.mrf.mxu0 }
 0x4b4   : > { %v1362_v24 = vpop.f32.mrf.mxu3  ;;  %1538 = vmatmul.f32.gmra.mxu0 %v1476_v55  ;;  %v1623_v44 = vpop.permute.xlu0 %1622 }
 0x4b5   : > { %1652 = vrot.lane.b32.xlu0 %v1362_v24, %s2339_s13  ;;  %s2277_s13 = scalar_lea.hbm %s3217_s5, 256 }
 0x4b6   : > { %p2279_p2 = scmp.lt.s32.totalorder %s2277_s13, %s2273_s12 }
 0x4b8   : > { %1704 = vrot.lane.b32.xlu1 %v1521_v54, %s2340_s14  ;;  %v3072_v0 = vpop.f32.mrf.mxu1  ;;  %p2280_p3 = por %p2279_p2, %p2278_p1 }
 0x4ba   : > { %p2281_p5 = pnand %p2280_p3, %p2276_p0 }
 0x4bd   : > { %1690 = vrot.lane.b32.xlu0 %v1500_v22, %s2340_s14 }
 0x4c0   : > { %v3080_v62 = vpop.f32.mrf.mxu1 }
 0x4c2   : > { %v1524_v61 = vpop.f32.mrf.mxu0  ;;  %v1563_v30 = vpop.permute.xlu1 %1562 }
 0x4c3   : > { %1706 = vrot.lane.b32.xlu2 %v1524_v61, %s2340_s14  ;;  %v1736_v31 = vsel %vm573_vm0, %v969_v33, %v1563_v30 }
 0x4c4   : > { %v3064_v12 = vsel %vm1750_vm1, %v1736_v31, %v1627_v38 }
 0x4c5   : > { %1696 = vrot.lane.b32.xlu0 %v1509_v59, %s2340_s14  ;;  %v1738_v59 = vsel %vm573_vm0, %v3029_v5, %v1567_v42  ;;  %v1629_v5 = vpop.permute.xlu0 %1628 }
 0x4c8   : > { %v1005_v37 = vpop.f32.mrf.mxu1 }
 0x4ca   : > { %v1527_v41 = vpop.f32.mrf.mxu0  ;;  %v1569_v49 = vpop.permute.xlu1 %1568 }
 0x4cb   : > { %v1739_v35 = vsel %vm573_vm0, %v978_v3, %v1569_v49 }
 0x4cc   : > { %v3069_v36 = vsel %vm1750_vm1, %v1739_v35, %v1633_v11 }
 0x4cd   : > { %1702 = vrot.lane.b32.xlu0 %v1518_v21, %s2340_s14  ;;  %v1635_v11 = vpop.permute.xlu0 %1634 }
 0x4d2   : > { %v1530_v40 = vpop.f32.mrf.mxu0  ;;  %v1575_v7 = vpop.permute.xlu1 %1574 }
 0x4d3   : > { %1710 = vrot.lane.b32.xlu1 %v1530_v40, %s2340_s14  ;;  %v1742_v26 = vsel %vm573_vm0, %v987_v27, %v1575_v7  ;;  %v1741_v27 = vsel %vm573_vm0, %v3045_v10, %v1573_v46  ;;  %v1734_v10 = vsel %vm573_vm0, %v3006_v17, %v3019_v23 }
 0x4d4   : > { %v3077_v45 = vsel %vm1750_vm1, %v1742_v26, %v1639_v58  ;;  %v1751_v61 = vsel %vm1750_vm1, %v1734_v10, %v1623_v44  ;;  %v1744_v58 = vsel %vm573_vm0, %v3058_v9, %v1579_v15  ;;  %v1008_v26 = vpop.f32.mrf.mxu1 }
 0x4d5   : > { %1708 = vrot.lane.b32.xlu0 %v1527_v41, %s2340_s14  ;;  %v1641_v47 = vpop.permute.xlu0 %1640 }
 0x4da   : > { %v1533_v39 = vpop.f32.mrf.mxu0  ;;  %v1581_v8 = vpop.permute.xlu1 %1580 }
 0x4db   : > { %1712 = vrot.lane.b32.xlu2 %v1533_v39, %s2340_s14  ;;  %v1745_v63 = vsel %vm573_vm0, %v996_v34, %v1581_v8  ;;  %v1737_v34 = vsel %vm573_vm0, %v3021_v20, %v3027_v28  ;;  %v1740_v20 = vsel %vm573_vm0, %v3038_v25, %v3035_v51  ;;  %v1743_v8 = vsel %vm573_vm0, %v3054_v1, %v3041_v6 }
 0x4dc   : > { %v3085_v4 = vsel %vm1750_vm1, %v1745_v63, %v1645_v2  ;;  %v1754_v41 = vsel %vm1750_vm1, %v1737_v34, %v1629_v5  ;;  %v1757_v28 = vsel %vm1750_vm1, %v1740_v20, %v1635_v11  ;;  %v1749_v2 = vsel %vm573_vm0, %v1008_v26, %v3050_v48 }
 0x4dd   : > { %v1647_v40 = vpop.permute.xlu0 %1646  ;;  %v1760_v51 = vsel %vm1750_vm1, %v1743_v8, %v1641_v47  ;;  %v1747_v6 = vsel %vm573_vm0, %v3080_v62, %v1585_v18  ;;  %v1746_v62 = vsel %vm573_vm0, %v3072_v0, %v3047_v52 }
 0x4de   : > { %v1651_v53 = vpop.permute.xlu2 %1650 }
 0x4e2   : > { %v1587_v56 = vpop.permute.xlu1 %1586 }
 0x4e3   : > { %v1748_v22 = vsel %vm573_vm0, %v1005_v37, %v1587_v56 }
 0x4e4   : > { %v3090_v33 = vsel %vm1750_vm1, %v1748_v22, %v1651_v53 }
 0x4e6   : > { %v1689_v60 = vpop.permute.xlu2 %1688 }
 0x4ea   : > { %v1625_v16 = vpop.permute.xlu1 %1624 }
 0x4eb   : > { %v1752_v50 = vsel %vm1750_vm1, %v1735_v14, %v1625_v16  ;;  %v1763_v16 = vsel %vm1750_vm1, %v1746_v62, %v1647_v40 }
 0x4ec   : > { %v1769_v43 = vsel %vm1767_vm2, %v1752_v50, %v1689_v60 }
 0x4ed   : > { %1785 = vst [vmem:[%s3098_s17 + $0x8] sm:$0xff] %v1769_v43 }
 0x4ee   : > { %v1695_v13 = vpop.permute.xlu2 %1694 }
 0x4f2   : > { %v1631_v3 = vpop.permute.xlu1 %1630 }
 0x4f3   : > { %v1755_v32 = vsel %vm1750_vm1, %v1738_v59, %v1631_v3 }
 0x4f4   : > { %v1772_v19 = vsel %vm1767_vm2, %v1755_v32, %v1695_v13 }
 0x4f5   : > { %1788 = vst [vmem:[%s3098_s17 + $0x20] sm:$0xff] %v1772_v19 }
 0x4f6   : > { %v1701_v21 = vpop.permute.xlu2 %1700 }
 0x4fa   : > { %v1637_v29 = vpop.permute.xlu1 %1636 }
 0x4fb   : > { %v1758_v57 = vsel %vm1750_vm1, %v1741_v27, %v1637_v29 }
 0x4fc   : > { %v1775_v55 = vsel %vm1767_vm2, %v1758_v57, %v1701_v21 }
 0x4fd   : > { %1791 = vst [vmem:[%s3098_s17 + $0x38] sm:$0xff] %v1775_v55 }
 0x500   : > { %v1536_v24 = vpop.f32.mrf.mxu0 }
 0x501   : > { %1714 = vrot.lane.b32.xlu0 %v1536_v24, %s2340_s14 }
 0x502   : > { %v1643_v38 = vpop.permute.xlu1 %1642 }
 0x503   : > { %v1761_v23 = vsel %vm1750_vm1, %v1744_v58, %v1643_v38 }
 0x50a   : > { %v1649_v54 = vpop.permute.xlu1 %1648 }
 0x50b   : > { %v1764_v1 = vsel %vm1750_vm1, %v1747_v6, %v1649_v54 }
 0x512   : > { %v1687_v30 = vpop.permute.xlu1 %1686 }
 0x513   : > { %v1768_v31 = vsel %vm1767_vm2, %v1751_v61, %v1687_v30 }
 0x514   : > { %1784 = vst [vmem:[%s3098_s17] sm:$0xff] %v1768_v31 }
 0x51a   : > { %v1693_v49 = vpop.permute.xlu1 %1692 }
 0x51b   : > { %v1771_v17 = vsel %vm1767_vm2, %v1754_v41, %v1693_v49 }
 0x51c   : > { %1787 = vst [vmem:[%s3098_s17 + $0x18] sm:$0xff] %v1771_v17 }
 0x51d   : > { %v1707_v35 = vpop.permute.xlu2 %1706 }
 0x51e   : > { %v1778_v42 = vsel %vm1767_vm2, %v1761_v23, %v1707_v35 }
 0x51f   : > { %1794 = vst [vmem:[%s3098_s17 + $0x50] sm:$0xff] %v1778_v42 }
 0x522   : > { %v1699_v7 = vpop.permute.xlu1 %1698 }
 0x523   : > { %v1774_v9 = vsel %vm1767_vm2, %v1757_v28, %v1699_v7 }
 0x524   : > { %1790 = vst [vmem:[%s3098_s17 + $0x30] sm:$0xff] %v1774_v9 }
 0x527   : > { %v1653_v46 = vpop.permute.xlu0 %1652 }
 0x528   : > { %v1766_v39 = vsel %vm1750_vm1, %v1749_v2, %v1653_v46 }
 0x52a   : > { %v1705_v25 = vpop.permute.xlu1 %1704 }
 0x52b   : > { %v1777_v63 = vsel %vm1767_vm2, %v1760_v51, %v1705_v25 }
 0x52c   : > { %1793 = vst [vmem:[%s3098_s17 + $0x48] sm:$0xff] %v1777_v63 }
 0x52f   : > { %v1691_v53 = vpop.permute.xlu0 %1690 }
 0x530   : > { %v1770_v48 = vsel %vm1767_vm2, %v3064_v12, %v1691_v53 }
 0x531   : > { %1786 = vst [vmem:[%s3098_s17 + $0x10] sm:$0xff] %v1770_v48  ;;  %v1539_v37 = vpop.f32.mrf.mxu0 }
 0x532   : > { %1716 = vrot.lane.b32.xlu1 %v1539_v37, %s2340_s14 }
 0x535   : > { %v1713_v56 = vpop.permute.xlu2 %1712 }
 0x536   : > { %v1781_v15 = vsel %vm1767_vm2, %v1764_v1, %v1713_v56 }
 0x537   : > { %1797 = vst [vmem:[%s3098_s17 + $0x68] sm:$0xff] %v1781_v15  ;;  %v1697_v22 = vpop.permute.xlu0 %1696 }
 0x538   : > { %v1773_v12 = vsel %vm1767_vm2, %v3069_v36, %v1697_v22 }
 0x539   : > { %1789 = vst [vmem:[%s3098_s17 + $0x28] sm:$0xff] %v1773_v12 }
 0x53f   : > { %v1703_v60 = vpop.permute.xlu0 %1702 }
 0x540   : > { %v1776_v14 = vsel %vm1767_vm2, %v3077_v45, %v1703_v60 }
 0x541   : > { %1792 = vst [vmem:[%s3098_s17 + $0x40] sm:$0xff] %v1776_v14 }
 0x545   : > { %v1711_v50 = vpop.permute.xlu1 %1710 }
 0x546   : > { %v1780_v43 = vsel %vm1767_vm2, %v1763_v16, %v1711_v50 }
 0x547   : > { %1796 = vst [vmem:[%s3098_s17 + $0x60] sm:$0xff] %v1780_v43  ;;  %v1709_v36 = vpop.permute.xlu0 %1708 }
 0x548   : > { %v1779_v18 = vsel %vm1767_vm2, %v3085_v4, %v1709_v36 }
 0x549   : > { %1795 = vst [vmem:[%s3098_s17 + $0x58] sm:$0xff] %v1779_v18 }
 0x573   : > { %v1715_v13 = vpop.permute.xlu0 %1714 }
 0x574   : > { %v1782_v45 = vsel %vm1767_vm2, %v3090_v33, %v1715_v13 }
 0x575   : > { %1798 = vst [vmem:[%s3098_s17 + $0x70] sm:$0xff] %v1782_v45 }
 0x5a4   : > { %v1717_v52 = vpop.permute.xlu1 %1716 }
 0x5a5   : > { %v1783_v0 = vsel %vm1767_vm2, %v1766_v39, %v1717_v52 }
 0x5a6   : > { %1799 = vst [vmem:[%s3098_s17 + $0x78] sm:$0xff] %v1783_v0 }
 0x5a7   : > { %2284 = shalt.err (!%p2281_p5)
}
 0x5a8   : > { %s2341_s15 = smov 128   ;;  %s2342_s17 = smov 8  }
 0x5a9   : > { %2000 = dma.vmem_to_hbm [thread:$0]  (%p2413_p4), %s1816_s9, 2048, %s1818_s10, %s1801_s7, %s2341_s15, %s2341_s15, %s2342_s17  }
 0x5aa PF: > { %p2006_p6 = scmp.ge.s32.totalorder %s2335_s23, 2  ;;  %s1832_s24 = sand.u32 1, %s2315_s18  }
 0x5ab   : > { %s1833_s25 = scalar_lea.sflag [#allocation3], %s1832_s24 }
 0x5ac   : > { %p2003_p7 = pnand %p2006_p6, %p2420_p8 }
 0x5ae   : > { %p2004_p9 = pneg %p2003_p7 }
 0x5b0   : > { %2310 = dma.done.wait (%p2004_p9), %s1833_s25, 2048  }
 0x5b1   : > { %2312 = vsyncadd (%p2004_p9), %s1833_s25, 4294965248  ;;  %s18_s23 = sadd.s32 1, %s2335_s23   ;;  %s3220_s18 = smov %s2319_s19 }
 0x5b2   : > { %p15_p10 = scmp.ge.s32.totalorder %s18_s23, 4   ;;  %s3221_s19 = smov %s2323_s20 }
 0x5b3   : > { %s3222_s20 = smov %s2426_s6  ;;  %s3223_s21 = smov %s2331_s22 }
 0x5b4   : > { %s3224_s22 = smov %s3226_s26  ;;  %17 = sbr.rel (!%p15_p10) target bundleno = 4 (0x4), region = 87 }
 0x5b9   :  { %1839 = vsyncpa [#allocation3], 1 }
 0x5ba   :  { %1841 = vsyncpa [#allocation3 + $0x1], 1 }

</bundles_post_ra>
